<compile_context>
chip_gen: v6e
topology: v6e:2x2x1
jax: 0.10.0
libtpu: 0.0.40
codegen_flags: <defaults>
</compile_context>

<pallas_src>
import jax
import jax.numpy as jnp
from jax import lax
from jax.experimental import pallas as pl
from jax.experimental.pallas import tpu as pltpu

VOCAB = 10
EMBED = 32
HIDDEN = 64
OUT = 10

VPAD = 32                    # per-token one-hot width (vocab 10 padded to 32)
OUT_PAD = 128                # lane-dense logits width (10 padded to 128)
K_FUSED = 2 * VPAD + HIDDEN  # = 128, fused contraction dim for both RNN layers


def rnn_fused_kernel(ids1_ref, ids2_ref, w0_ref, b0_ref, w1_ref, b1_ref,
                     wd_ref, bd_ref, out_ref):
    T = out_ref.shape[0]
    B = out_ref.shape[1]

    # Hoist weights / biases / iota constants out of the time loop so they stay
    # resident in vregs across all steps (JAX does not CSE broadcast_in_dim).
    w0 = w0_ref[...]                                    # (128, 64)
    w1 = w1_ref[...]                                    # (128, 64)
    wd = wd_ref[...]                                    # (64, 128)
    b0 = jnp.broadcast_to(b0_ref[...], (B, HIDDEN))
    b1 = jnp.broadcast_to(b1_ref[...], (B, HIDDEN))
    bd = jnp.broadcast_to(bd_ref[...], (B, OUT_PAD))

    lane = lax.broadcasted_iota(jnp.int32, (B, 2 * VPAD), 1)   # (B, 64)
    first_half = lane < VPAD
    lane_mod = jnp.where(first_half, lane, lane - VPAD)

    def step(t, carry):
        h1, h2 = carry
        id1 = ids1_ref[t]                               # (B, 1) int32
        id2 = ids2_ref[t]                               # (B, 1) int32
        # one-hot of [num1 | num2]: lanes 0..31 select num1's embedding row,
        # lanes 32..63 select num2's (embedding table folded into w0).
        target = jnp.where(first_half, id1, id2)        # (B, 64) int32
        onehot = (target == lane_mod).astype(jnp.float32)

        # layer 0: h1 = tanh([onehot | h1] @ [[E@Wih0a],[E@Wih0b],[Whh0]] + b0)
        lhs0 = jnp.concatenate([onehot, h1], axis=1)    # (B, 128)
        h1n = jnp.tanh(
            jnp.dot(lhs0, w0, preferred_element_type=jnp.float32) + b0)

        # layer 1: h2 = tanh([h1 | h2] @ [[Wih1],[Whh1]] + b1)
        lhs1 = jnp.concatenate([h1n, h2], axis=1)       # (B, 128)
        h2n = jnp.tanh(
            jnp.dot(lhs1, w1, preferred_element_type=jnp.float32) + b1)

        # dense (lane-dense, padded to 128 output lanes)
        out_ref[t] = (jnp.dot(h2n, wd, preferred_element_type=jnp.float32)
                      + bd).astype(out_ref.dtype)
        return (h1n, h2n)

    if T <= 16:
        unroll = T            # fully unroll small sequences
    elif T % 4 == 0:
        unroll = 4
    else:
        unroll = 2 if T % 2 == 0 else 1

    h_init = jnp.zeros((B, HIDDEN), jnp.float32)
    lax.fori_loop(0, T, step, (h_init, h_init), unroll=unroll)


def rnn_forward_pallas(ids1_tm, ids2_tm, packed):
    """ids*_tm: (T, B_pad, 1) int32 token ids. Returns (T, B_pad, 128) f32."""
    T, Bp, _ = ids1_tm.shape
    w0, b0, w1, b1, wd, bd = packed

    full2 = lambda i: (0, 0)
    full3 = lambda i: (0, 0, 0)

    return pl.pallas_call(
        rnn_fused_kernel,
        out_shape=jax.ShapeDtypeStruct((T, Bp, OUT_PAD), jnp.float32),
        grid_spec=pltpu.PrefetchScalarGridSpec(
            num_scalar_prefetch=0,
            grid=(1,),
            in_specs=[
                pl.BlockSpec((T, Bp, 1), full3),          # num1 ids
                pl.BlockSpec((T, Bp, 1), full3),          # num2 ids
                pl.BlockSpec((K_FUSED, HIDDEN), full2),   # W0 = [E@Wih0a; E@Wih0b; Whh0]
                pl.BlockSpec((1, HIDDEN), full2),         # b_ih0 + b_hh0
                pl.BlockSpec((K_FUSED, HIDDEN), full2),   # W1 = [Wih1; Whh1]
                pl.BlockSpec((1, HIDDEN), full2),         # b_ih1 + b_hh1
                pl.BlockSpec((HIDDEN, OUT_PAD), full2),   # dense W (padded to 128)
                pl.BlockSpec((1, OUT_PAD), full2),        # dense b (padded to 128)
            ],
            out_specs=pl.BlockSpec((T, Bp, OUT_PAD), full3),
        ),
        compiler_params=pltpu.CompilerParams(
            dimension_semantics=("arbitrary",)),
    )(ids1_tm, ids2_tm, w0, b0, w1, b1, wd, bd)


def init_params(key):
    """Raw parameters with nn.Embedding / nn.RNN / nn.Linear layouts."""
    ks = jax.random.split(key, 11)
    scale = 1.0 / jnp.sqrt(HIDDEN)

    def u(k, shape):
        return jax.random.uniform(k, shape, jnp.float32, -scale, scale)

    return dict(
        embed=jax.random.normal(ks[0], (VOCAB, EMBED), jnp.float32),
        wih0=u(ks[1], (HIDDEN, HIDDEN)), whh0=u(ks[2], (HIDDEN, HIDDEN)),
        bih0=u(ks[3], (HIDDEN,)), bhh0=u(ks[4], (HIDDEN,)),
        wih1=u(ks[5], (HIDDEN, HIDDEN)), whh1=u(ks[6], (HIDDEN, HIDDEN)),
        bih1=u(ks[7], (HIDDEN,)), bhh1=u(ks[8], (HIDDEN,)),
        wd=u(ks[9], (OUT, HIDDEN)), bd=u(ks[10], (OUT,)),
    )


def pack_params(p):
    """Fold embedding into layer-0 weights; stack [W_ih; W_hh]; pad dense to 128."""
    wih0_t, whh0_t = p["wih0"].T, p["whh0"].T            # (in, hid)
    wih1_t, whh1_t = p["wih1"].T, p["whh1"].T

    q1 = p["embed"] @ wih0_t[:EMBED, :]                  # (10, 64)
    q2 = p["embed"] @ wih0_t[EMBED:, :]                  # (10, 64)
    q1p = jnp.zeros((VPAD, HIDDEN), jnp.float32).at[:VOCAB].set(q1)
    q2p = jnp.zeros((VPAD, HIDDEN), jnp.float32).at[:VOCAB].set(q2)

    w0 = jnp.concatenate([q1p, q2p, whh0_t], axis=0)     # (128, 64)
    b0 = (p["bih0"] + p["bhh0"]).reshape(1, HIDDEN)
    w1 = jnp.concatenate([wih1_t, whh1_t], axis=0)       # (128, 64)
    b1 = (p["bih1"] + p["bhh1"]).reshape(1, HIDDEN)

    wd = jnp.zeros((HIDDEN, OUT_PAD), jnp.float32).at[:, :OUT].set(p["wd"].T)
    bd = jnp.zeros((1, OUT_PAD), jnp.float32).at[0, :OUT].set(p["bd"])
    return (w0, b0, w1, b1, wd, bd)


@jax.jit
def model_forward(num1, num2, packed):
    """num1, num2: (B, T) int32 token ids in [0, 10). Returns (B, T, 10) logits."""
    B, T = num1.shape
    Bp = ((B + 7) // 8) * 8                              # pad batch to sublane multiple
    pad = Bp - B
    n1 = jnp.pad(num1, ((0, pad), (0, 0)))
    n2 = jnp.pad(num2, ((0, pad), (0, 0)))
    ids1 = jnp.transpose(n1, (1, 0))[:, :, None].astype(jnp.int32)   # (T, Bp, 1)
    ids2 = jnp.transpose(n2, (1, 0))[:, :, None].astype(jnp.int32)
    out_tm = rnn_forward_pallas(ids1, ids2, packed)      # (T, Bp, 128)
    return jnp.transpose(out_tm[:, :B, :OUT], (1, 0, 2)) # (B, T, 10)


def reference_forward(num1, num2, p):
    """Pure-JAX reference following the PyTorch module exactly."""
    x1 = jnp.take(p["embed"], num1, axis=0)
    x2 = jnp.take(p["embed"], num2, axis=0)
    x = jnp.concatenate([x1, x2], axis=2)                # (B, T, 64)
    B = x.shape[0]
    h0 = jnp.zeros((B, HIDDEN), jnp.float32)
    h1 = jnp.zeros((B, HIDDEN), jnp.float32)
    wih0, whh0 = p["wih0"].T, p["whh0"].T
    wih1, whh1 = p["wih1"].T, p["whh1"].T
    b0 = p["bih0"] + p["bhh0"]
    b1 = p["bih1"] + p["bhh1"]
    wd, bd = p["wd"].T, p["bd"]

    def step(carry, x_t):
        h0, h1 = carry
        h0 = jnp.tanh(x_t @ wih0 + h0 @ whh0 + b0)
        h1 = jnp.tanh(h0 @ wih1 + h1 @ whh1 + b1)
        return (h0, h1), h1 @ wd + bd

    _, outs = lax.scan(step, (h0, h1), jnp.transpose(x, (1, 0, 2)))
    return jnp.transpose(outs, (1, 0, 2))


if __name__ == "__main__":
    B, T = 2, 8
    key = jax.random.PRNGKey(0)
    k1, k2 = jax.random.split(key)
    num1 = jax.random.randint(k1, (B, T), 0, VOCAB, dtype=jnp.int32)
    num2 = jax.random.randint(k2, (B, T), 0, VOCAB, dtype=jnp.int32)

    params = init_params(jax.random.PRNGKey(42))
    packed = pack_params(params)

    logits = model_forward(num1, num2, packed)
    logits = jax.block_until_ready(logits)
    assert logits.shape == (B, T, OUT), logits.shape

    ref = reference_forward(num1, num2, params)
    max_err = jnp.max(jnp.abs(logits - ref))
    assert jnp.allclose(logits, ref, atol=1e-2, rtol=1e-2), (
        f"mismatch vs reference, max abs err {max_err}")

    print("KERNEL_OK")
</pallas_src>

<mosaic_0001>
module attributes {stable_mosaic.version = 11 : i64} {
  func.func @rnn_fused_kernel(%arg0: i32, %arg1: memref<8x8x1xi32, #tpu.memory_space<vmem>>, %arg2: memref<8x8x1xi32, #tpu.memory_space<vmem>>, %arg3: memref<128x64xf32, #tpu.memory_space<vmem>>, %arg4: memref<1x64xf32, #tpu.memory_space<vmem>>, %arg5: memref<128x64xf32, #tpu.memory_space<vmem>>, %arg6: memref<1x64xf32, #tpu.memory_space<vmem>>, %arg7: memref<64x128xf32, #tpu.memory_space<vmem>>, %arg8: memref<1x128xf32, #tpu.memory_space<vmem>>, %arg9: memref<8x8x128xf32, #tpu.memory_space<vmem>>) attributes {dimension_semantics = [#tpu.dimension_semantics<arbitrary>], iteration_bounds = array<i64: 1>, scalar_prefetch = 0 : i64, scratch_operands = 0 : i64, tpu.core_type = #tpu.core_type<tc>, window_params = [{pipeline_mode = #tpu.pipeline_mode<synchronous>, transform_indices = @transform_0, window_bounds = array<i64: 8, 8, 1>}, {pipeline_mode = #tpu.pipeline_mode<synchronous>, transform_indices = @transform_1, window_bounds = array<i64: 8, 8, 1>}, {pipeline_mode = #tpu.pipeline_mode<synchronous>, transform_indices = @transform_2, window_bounds = array<i64: 128, 64>}, {pipeline_mode = #tpu.pipeline_mode<synchronous>, transform_indices = @transform_3, window_bounds = array<i64: 1, 64>}, {pipeline_mode = #tpu.pipeline_mode<synchronous>, transform_indices = @transform_4, window_bounds = array<i64: 128, 64>}, {pipeline_mode = #tpu.pipeline_mode<synchronous>, transform_indices = @transform_5, window_bounds = array<i64: 1, 64>}, {pipeline_mode = #tpu.pipeline_mode<synchronous>, transform_indices = @transform_6, window_bounds = array<i64: 64, 128>}, {pipeline_mode = #tpu.pipeline_mode<synchronous>, transform_indices = @transform_7, window_bounds = array<i64: 1, 128>}, {pipeline_mode = #tpu.pipeline_mode<synchronous>, transform_indices = @transform_8, window_bounds = array<i64: 8, 8, 128>}]} {
    %c0 = arith.constant 0 : index
    %c0_0 = arith.constant 0 : index
    %0 = vector.load %arg3[%c0, %c0_0] : memref<128x64xf32, #tpu.memory_space<vmem>>, vector<128x64xf32>
    %c0_1 = arith.constant 0 : index
    %c0_2 = arith.constant 0 : index
    %1 = vector.load %arg5[%c0_1, %c0_2] : memref<128x64xf32, #tpu.memory_space<vmem>>, vector<128x64xf32>
    %c0_3 = arith.constant 0 : index
    %c0_4 = arith.constant 0 : index
    %2 = vector.load %arg7[%c0_3, %c0_4] : memref<64x128xf32, #tpu.memory_space<vmem>>, vector<64x128xf32>
    %c0_5 = arith.constant 0 : index
    %c0_6 = arith.constant 0 : index
    %3 = vector.load %arg4[%c0_5, %c0_6] : memref<1x64xf32, #tpu.memory_space<vmem>>, vector<1x64xf32>
    %4 = vector.shape_cast %3 : vector<1x64xf32> to vector<1x64xf32>
    %5 = vector.broadcast %4 : vector<1x64xf32> to vector<8x64xf32>
    %c0_7 = arith.constant 0 : index
    %c0_8 = arith.constant 0 : index
    %6 = vector.load %arg6[%c0_7, %c0_8] : memref<1x64xf32, #tpu.memory_space<vmem>>, vector<1x64xf32>
    %7 = vector.shape_cast %6 : vector<1x64xf32> to vector<1x64xf32>
    %8 = vector.broadcast %7 : vector<1x64xf32> to vector<8x64xf32>
    %c0_9 = arith.constant 0 : index
    %c0_10 = arith.constant 0 : index
    %9 = vector.load %arg8[%c0_9, %c0_10] : memref<1x128xf32, #tpu.memory_space<vmem>>, vector<1x128xf32>
    %10 = vector.shape_cast %9 : vector<1x128xf32> to vector<1x128xf32>
    %11 = vector.broadcast %10 : vector<1x128xf32> to vector<8x128xf32>
    %12 = tpu.iota {dimensions = array<i32: 1>} : vector<8x64xi32>
    %c32_i32 = arith.constant 32 : i32
    %13 = vector.broadcast %c32_i32 : i32 to vector<8x64xi32>
    %14 = arith.cmpi slt, %12, %13 : vector<8x64xi32>
    %c32_i32_11 = arith.constant 32 : i32
    %15 = vector.broadcast %c32_i32_11 : i32 to vector<8x64xi32>
    %16 = arith.subi %12, %15 : vector<8x64xi32>
    %17 = arith.select %14, %12, %16 : vector<8x64xi1>, vector<8x64xi32>
    %cst = arith.constant 0.000000e+00 : f32
    %18 = vector.broadcast %cst : f32 to vector<8x64xf32>
    %c0_i32 = arith.constant 0 : i32
    %19 = arith.index_cast %c0_i32 : i32 to index
    %c0_12 = arith.constant 0 : index
    %c0_13 = arith.constant 0 : index
    %20 = vector.load %arg1[%19, %c0_12, %c0_13] : memref<8x8x1xi32, #tpu.memory_space<vmem>>, vector<1x8x1xi32>
    %21 = vector.shape_cast %20 : vector<1x8x1xi32> to vector<8x1xi32>
    %22 = arith.index_cast %c0_i32 : i32 to index
    %c0_14 = arith.constant 0 : index
    %c0_15 = arith.constant 0 : index
    %23 = vector.load %arg2[%22, %c0_14, %c0_15] : memref<8x8x1xi32, #tpu.memory_space<vmem>>, vector<1x8x1xi32>
    %24 = vector.shape_cast %23 : vector<1x8x1xi32> to vector<8x1xi32>
    %25 = vector.shape_cast %21 : vector<8x1xi32> to vector<8x1xi32>
    %26 = vector.broadcast %25 : vector<8x1xi32> to vector<8x64xi32>
    %27 = vector.shape_cast %24 : vector<8x1xi32> to vector<8x1xi32>
    %28 = vector.broadcast %27 : vector<8x1xi32> to vector<8x64xi32>
    %29 = arith.select %14, %26, %28 : vector<8x64xi1>, vector<8x64xi32>
    %30 = arith.cmpi eq, %29, %17 : vector<8x64xi32>
    %31 = arith.extui %30 : vector<8x64xi1> to vector<8x64xi32>
    %32 = arith.sitofp %31 : vector<8x64xi32> to vector<8x64xf32>
    %33 = tpu.concatenate %32, %18 in 1 : vector<8x64xf32>, vector<8x64xf32> -> vector<8x128xf32>
    %cst_16 = arith.constant dense<0.000000e+00> : vector<8x64xf32>
    %34 = tpu.matmul %33, %0, %cst_16 {dimension_numbers = #tpu.dot_dimension_numbers<[1], [0], [0], [1], [0, 0, 1, 1], [], []>} : vector<8x128xf32>, vector<128x64xf32>, vector<8x64xf32> -> vector<8x64xf32>
    %35 = arith.addf %34, %5 : vector<8x64xf32>
    %36 = math.tanh %35 : vector<8x64xf32>
    %37 = tpu.concatenate %36, %18 in 1 : vector<8x64xf32>, vector<8x64xf32> -> vector<8x128xf32>
    %cst_17 = arith.constant dense<0.000000e+00> : vector<8x64xf32>
    %38 = tpu.matmul %37, %1, %cst_17 {dimension_numbers = #tpu.dot_dimension_numbers<[1], [0], [0], [1], [0, 0, 1, 1], [], []>} : vector<8x128xf32>, vector<128x64xf32>, vector<8x64xf32> -> vector<8x64xf32>
    %39 = arith.addf %38, %8 : vector<8x64xf32>
    %40 = math.tanh %39 : vector<8x64xf32>
    %cst_18 = arith.constant dense<0.000000e+00> : vector<8x128xf32>
    %41 = tpu.matmul %40, %2, %cst_18 {dimension_numbers = #tpu.dot_dimension_numbers<[1], [0], [0], [1], [0, 0, 1, 1], [], []>} : vector<8x64xf32>, vector<64x128xf32>, vector<8x128xf32> -> vector<8x128xf32>
    %42 = arith.addf %41, %11 : vector<8x128xf32>
    %43 = arith.index_cast %c0_i32 : i32 to index
    %c0_19 = arith.constant 0 : index
    %c0_20 = arith.constant 0 : index
    %44 = vector.load %arg9[%43, %c0_19, %c0_20] : memref<8x8x128xf32, #tpu.memory_space<vmem>>, vector<1x8x128xf32>
    %45 = vector.shape_cast %44 : vector<1x8x128xf32> to vector<8x128xf32>
    %46 = vector.shape_cast %42 : vector<8x128xf32> to vector<1x8x128xf32>
    tpu.vector_store %arg9[%43, %c0_19, %c0_20], %46 {strides = array<i32>} : memref<8x8x128xf32, #tpu.memory_space<vmem>>, vector<1x8x128xf32>,
    %c1_i32 = arith.constant 1 : i32
    %47 = arith.index_cast %c1_i32 : i32 to index
    %c0_21 = arith.constant 0 : index
    %c0_22 = arith.constant 0 : index
    %48 = vector.load %arg1[%47, %c0_21, %c0_22] : memref<8x8x1xi32, #tpu.memory_space<vmem>>, vector<1x8x1xi32>
    %49 = vector.shape_cast %48 : vector<1x8x1xi32> to vector<8x1xi32>
    %50 = arith.index_cast %c1_i32 : i32 to index
    %c0_23 = arith.constant 0 : index
    %c0_24 = arith.constant 0 : index
    %51 = vector.load %arg2[%50, %c0_23, %c0_24] : memref<8x8x1xi32, #tpu.memory_space<vmem>>, vector<1x8x1xi32>
    %52 = vector.shape_cast %51 : vector<1x8x1xi32> to vector<8x1xi32>
    %53 = vector.shape_cast %49 : vector<8x1xi32> to vector<8x1xi32>
    %54 = vector.broadcast %53 : vector<8x1xi32> to vector<8x64xi32>
    %55 = vector.shape_cast %52 : vector<8x1xi32> to vector<8x1xi32>
    %56 = vector.broadcast %55 : vector<8x1xi32> to vector<8x64xi32>
    %57 = arith.select %14, %54, %56 : vector<8x64xi1>, vector<8x64xi32>
    %58 = arith.cmpi eq, %57, %17 : vector<8x64xi32>
    %59 = arith.extui %58 : vector<8x64xi1> to vector<8x64xi32>
    %60 = arith.sitofp %59 : vector<8x64xi32> to vector<8x64xf32>
    %61 = tpu.concatenate %60, %36 in 1 : vector<8x64xf32>, vector<8x64xf32> -> vector<8x128xf32>
    %cst_25 = arith.constant dense<0.000000e+00> : vector<8x64xf32>
    %62 = tpu.matmul %61, %0, %cst_25 {dimension_numbers = #tpu.dot_dimension_numbers<[1], [0], [0], [1], [0, 0, 1, 1], [], []>} : vector<8x128xf32>, vector<128x64xf32>, vector<8x64xf32> -> vector<8x64xf32>
    %63 = arith.addf %62, %5 : vector<8x64xf32>
    %64 = math.tanh %63 : vector<8x64xf32>
    %65 = tpu.concatenate %64, %40 in 1 : vector<8x64xf32>, vector<8x64xf32> -> vector<8x128xf32>
    %cst_26 = arith.constant dense<0.000000e+00> : vector<8x64xf32>
    %66 = tpu.matmul %65, %1, %cst_26 {dimension_numbers = #tpu.dot_dimension_numbers<[1], [0], [0], [1], [0, 0, 1, 1], [], []>} : vector<8x128xf32>, vector<128x64xf32>, vector<8x64xf32> -> vector<8x64xf32>
    %67 = arith.addf %66, %8 : vector<8x64xf32>
    %68 = math.tanh %67 : vector<8x64xf32>
    %cst_27 = arith.constant dense<0.000000e+00> : vector<8x128xf32>
    %69 = tpu.matmul %68, %2, %cst_27 {dimension_numbers = #tpu.dot_dimension_numbers<[1], [0], [0], [1], [0, 0, 1, 1], [], []>} : vector<8x64xf32>, vector<64x128xf32>, vector<8x128xf32> -> vector<8x128xf32>
    %70 = arith.addf %69, %11 : vector<8x128xf32>
    %71 = arith.index_cast %c1_i32 : i32 to index
    %c0_28 = arith.constant 0 : index
    %c0_29 = arith.constant 0 : index
    %72 = vector.load %arg9[%71, %c0_28, %c0_29] : memref<8x8x128xf32, #tpu.memory_space<vmem>>, vector<1x8x128xf32>
    %73 = vector.shape_cast %72 : vector<1x8x128xf32> to vector<8x128xf32>
    %74 = vector.shape_cast %70 : vector<8x128xf32> to vector<1x8x128xf32>
    tpu.vector_store %arg9[%71, %c0_28, %c0_29], %74 {strides = array<i32>} : memref<8x8x128xf32, #tpu.memory_space<vmem>>, vector<1x8x128xf32>,
    %c2_i32 = arith.constant 2 : i32
    %75 = arith.index_cast %c2_i32 : i32 to index
    %c0_30 = arith.constant 0 : index
    %c0_31 = arith.constant 0 : index
    %76 = vector.load %arg1[%75, %c0_30, %c0_31] : memref<8x8x1xi32, #tpu.memory_space<vmem>>, vector<1x8x1xi32>
    %77 = vector.shape_cast %76 : vector<1x8x1xi32> to vector<8x1xi32>
    %78 = arith.index_cast %c2_i32 : i32 to index
    %c0_32 = arith.constant 0 : index
    %c0_33 = arith.constant 0 : index
    %79 = vector.load %arg2[%78, %c0_32, %c0_33] : memref<8x8x1xi32, #tpu.memory_space<vmem>>, vector<1x8x1xi32>
    %80 = vector.shape_cast %79 : vector<1x8x1xi32> to vector<8x1xi32>
    %81 = vector.shape_cast %77 : vector<8x1xi32> to vector<8x1xi32>
    %82 = vector.broadcast %81 : vector<8x1xi32> to vector<8x64xi32>
    %83 = vector.shape_cast %80 : vector<8x1xi32> to vector<8x1xi32>
    %84 = vector.broadcast %83 : vector<8x1xi32> to vector<8x64xi32>
    %85 = arith.select %14, %82, %84 : vector<8x64xi1>, vector<8x64xi32>
    %86 = arith.cmpi eq, %85, %17 : vector<8x64xi32>
    %87 = arith.extui %86 : vector<8x64xi1> to vector<8x64xi32>
    %88 = arith.sitofp %87 : vector<8x64xi32> to vector<8x64xf32>
    %89 = tpu.concatenate %88, %64 in 1 : vector<8x64xf32>, vector<8x64xf32> -> vector<8x128xf32>
    %cst_34 = arith.constant dense<0.000000e+00> : vector<8x64xf32>
    %90 = tpu.matmul %89, %0, %cst_34 {dimension_numbers = #tpu.dot_dimension_numbers<[1], [0], [0], [1], [0, 0, 1, 1], [], []>} : vector<8x128xf32>, vector<128x64xf32>, vector<8x64xf32> -> vector<8x64xf32>
    %91 = arith.addf %90, %5 : vector<8x64xf32>
    %92 = math.tanh %91 : vector<8x64xf32>
    %93 = tpu.concatenate %92, %68 in 1 : vector<8x64xf32>, vector<8x64xf32> -> vector<8x128xf32>
    %cst_35 = arith.constant dense<0.000000e+00> : vector<8x64xf32>
    %94 = tpu.matmul %93, %1, %cst_35 {dimension_numbers = #tpu.dot_dimension_numbers<[1], [0], [0], [1], [0, 0, 1, 1], [], []>} : vector<8x128xf32>, vector<128x64xf32>, vector<8x64xf32> -> vector<8x64xf32>
    %95 = arith.addf %94, %8 : vector<8x64xf32>
    %96 = math.tanh %95 : vector<8x64xf32>
    %cst_36 = arith.constant dense<0.000000e+00> : vector<8x128xf32>
    %97 = tpu.matmul %96, %2, %cst_36 {dimension_numbers = #tpu.dot_dimension_numbers<[1], [0], [0], [1], [0, 0, 1, 1], [], []>} : vector<8x64xf32>, vector<64x128xf32>, vector<8x128xf32> -> vector<8x128xf32>
    %98 = arith.addf %97, %11 : vector<8x128xf32>
    %99 = arith.index_cast %c2_i32 : i32 to index
    %c0_37 = arith.constant 0 : index
    %c0_38 = arith.constant 0 : index
    %100 = vector.load %arg9[%99, %c0_37, %c0_38] : memref<8x8x128xf32, #tpu.memory_space<vmem>>, vector<1x8x128xf32>
    %101 = vector.shape_cast %100 : vector<1x8x128xf32> to vector<8x128xf32>
    %102 = vector.shape_cast %98 : vector<8x128xf32> to vector<1x8x128xf32>
    tpu.vector_store %arg9[%99, %c0_37, %c0_38], %102 {strides = array<i32>} : memref<8x8x128xf32, #tpu.memory_space<vmem>>, vector<1x8x128xf32>,
    %c3_i32 = arith.constant 3 : i32
    %103 = arith.index_cast %c3_i32 : i32 to index
    %c0_39 = arith.constant 0 : index
    %c0_40 = arith.constant 0 : index
    %104 = vector.load %arg1[%103, %c0_39, %c0_40] : memref<8x8x1xi32, #tpu.memory_space<vmem>>, vector<1x8x1xi32>
    %105 = vector.shape_cast %104 : vector<1x8x1xi32> to vector<8x1xi32>
    %106 = arith.index_cast %c3_i32 : i32 to index
    %c0_41 = arith.constant 0 : index
    %c0_42 = arith.constant 0 : index
    %107 = vector.load %arg2[%106, %c0_41, %c0_42] : memref<8x8x1xi32, #tpu.memory_space<vmem>>, vector<1x8x1xi32>
    %108 = vector.shape_cast %107 : vector<1x8x1xi32> to vector<8x1xi32>
    %109 = vector.shape_cast %105 : vector<8x1xi32> to vector<8x1xi32>
    %110 = vector.broadcast %109 : vector<8x1xi32> to vector<8x64xi32>
    %111 = vector.shape_cast %108 : vector<8x1xi32> to vector<8x1xi32>
    %112 = vector.broadcast %111 : vector<8x1xi32> to vector<8x64xi32>
    %113 = arith.select %14, %110, %112 : vector<8x64xi1>, vector<8x64xi32>
    %114 = arith.cmpi eq, %113, %17 : vector<8x64xi32>
    %115 = arith.extui %114 : vector<8x64xi1> to vector<8x64xi32>
    %116 = arith.sitofp %115 : vector<8x64xi32> to vector<8x64xf32>
    %117 = tpu.concatenate %116, %92 in 1 : vector<8x64xf32>, vector<8x64xf32> -> vector<8x128xf32>
    %cst_43 = arith.constant dense<0.000000e+00> : vector<8x64xf32>
    %118 = tpu.matmul %117, %0, %cst_43 {dimension_numbers = #tpu.dot_dimension_numbers<[1], [0], [0], [1], [0, 0, 1, 1], [], []>} : vector<8x128xf32>, vector<128x64xf32>, vector<8x64xf32> -> vector<8x64xf32>
    %119 = arith.addf %118, %5 : vector<8x64xf32>
    %120 = math.tanh %119 : vector<8x64xf32>
    %121 = tpu.concatenate %120, %96 in 1 : vector<8x64xf32>, vector<8x64xf32> -> vector<8x128xf32>
    %cst_44 = arith.constant dense<0.000000e+00> : vector<8x64xf32>
    %122 = tpu.matmul %121, %1, %cst_44 {dimension_numbers = #tpu.dot_dimension_numbers<[1], [0], [0], [1], [0, 0, 1, 1], [], []>} : vector<8x128xf32>, vector<128x64xf32>, vector<8x64xf32> -> vector<8x64xf32>
    %123 = arith.addf %122, %8 : vector<8x64xf32>
    %124 = math.tanh %123 : vector<8x64xf32>
    %cst_45 = arith.constant dense<0.000000e+00> : vector<8x128xf32>
    %125 = tpu.matmul %124, %2, %cst_45 {dimension_numbers = #tpu.dot_dimension_numbers<[1], [0], [0], [1], [0, 0, 1, 1], [], []>} : vector<8x64xf32>, vector<64x128xf32>, vector<8x128xf32> -> vector<8x128xf32>
    %126 = arith.addf %125, %11 : vector<8x128xf32>
    %127 = arith.index_cast %c3_i32 : i32 to index
    %c0_46 = arith.constant 0 : index
    %c0_47 = arith.constant 0 : index
    %128 = vector.load %arg9[%127, %c0_46, %c0_47] : memref<8x8x128xf32, #tpu.memory_space<vmem>>, vector<1x8x128xf32>
    %129 = vector.shape_cast %128 : vector<1x8x128xf32> to vector<8x128xf32>
    %130 = vector.shape_cast %126 : vector<8x128xf32> to vector<1x8x128xf32>
    tpu.vector_store %arg9[%127, %c0_46, %c0_47], %130 {strides = array<i32>} : memref<8x8x128xf32, #tpu.memory_space<vmem>>, vector<1x8x128xf32>,
    %c4_i32 = arith.constant 4 : i32
    %131 = arith.index_cast %c4_i32 : i32 to index
    %c0_48 = arith.constant 0 : index
    %c0_49 = arith.constant 0 : index
    %132 = vector.load %arg1[%131, %c0_48, %c0_49] : memref<8x8x1xi32, #tpu.memory_space<vmem>>, vector<1x8x1xi32>
    %133 = vector.shape_cast %132 : vector<1x8x1xi32> to vector<8x1xi32>
    %134 = arith.index_cast %c4_i32 : i32 to index
    %c0_50 = arith.constant 0 : index
    %c0_51 = arith.constant 0 : index
    %135 = vector.load %arg2[%134, %c0_50, %c0_51] : memref<8x8x1xi32, #tpu.memory_space<vmem>>, vector<1x8x1xi32>
    %136 = vector.shape_cast %135 : vector<1x8x1xi32> to vector<8x1xi32>
    %137 = vector.shape_cast %133 : vector<8x1xi32> to vector<8x1xi32>
    %138 = vector.broadcast %137 : vector<8x1xi32> to vector<8x64xi32>
    %139 = vector.shape_cast %136 : vector<8x1xi32> to vector<8x1xi32>
    %140 = vector.broadcast %139 : vector<8x1xi32> to vector<8x64xi32>
    %141 = arith.select %14, %138, %140 : vector<8x64xi1>, vector<8x64xi32>
    %142 = arith.cmpi eq, %141, %17 : vector<8x64xi32>
    %143 = arith.extui %142 : vector<8x64xi1> to vector<8x64xi32>
    %144 = arith.sitofp %143 : vector<8x64xi32> to vector<8x64xf32>
    %145 = tpu.concatenate %144, %120 in 1 : vector<8x64xf32>, vector<8x64xf32> -> vector<8x128xf32>
    %cst_52 = arith.constant dense<0.000000e+00> : vector<8x64xf32>
    %146 = tpu.matmul %145, %0, %cst_52 {dimension_numbers = #tpu.dot_dimension_numbers<[1], [0], [0], [1], [0, 0, 1, 1], [], []>} : vector<8x128xf32>, vector<128x64xf32>, vector<8x64xf32> -> vector<8x64xf32>
    %147 = arith.addf %146, %5 : vector<8x64xf32>
    %148 = math.tanh %147 : vector<8x64xf32>
    %149 = tpu.concatenate %148, %124 in 1 : vector<8x64xf32>, vector<8x64xf32> -> vector<8x128xf32>
    %cst_53 = arith.constant dense<0.000000e+00> : vector<8x64xf32>
    %150 = tpu.matmul %149, %1, %cst_53 {dimension_numbers = #tpu.dot_dimension_numbers<[1], [0], [0], [1], [0, 0, 1, 1], [], []>} : vector<8x128xf32>, vector<128x64xf32>, vector<8x64xf32> -> vector<8x64xf32>
    %151 = arith.addf %150, %8 : vector<8x64xf32>
    %152 = math.tanh %151 : vector<8x64xf32>
    %cst_54 = arith.constant dense<0.000000e+00> : vector<8x128xf32>
    %153 = tpu.matmul %152, %2, %cst_54 {dimension_numbers = #tpu.dot_dimension_numbers<[1], [0], [0], [1], [0, 0, 1, 1], [], []>} : vector<8x64xf32>, vector<64x128xf32>, vector<8x128xf32> -> vector<8x128xf32>
    %154 = arith.addf %153, %11 : vector<8x128xf32>
    %155 = arith.index_cast %c4_i32 : i32 to index
    %c0_55 = arith.constant 0 : index
    %c0_56 = arith.constant 0 : index
    %156 = vector.load %arg9[%155, %c0_55, %c0_56] : memref<8x8x128xf32, #tpu.memory_space<vmem>>, vector<1x8x128xf32>
    %157 = vector.shape_cast %156 : vector<1x8x128xf32> to vector<8x128xf32>
    %158 = vector.shape_cast %154 : vector<8x128xf32> to vector<1x8x128xf32>
    tpu.vector_store %arg9[%155, %c0_55, %c0_56], %158 {strides = array<i32>} : memref<8x8x128xf32, #tpu.memory_space<vmem>>, vector<1x8x128xf32>,
    %c5_i32 = arith.constant 5 : i32
    %159 = arith.index_cast %c5_i32 : i32 to index
    %c0_57 = arith.constant 0 : index
    %c0_58 = arith.constant 0 : index
    %160 = vector.load %arg1[%159, %c0_57, %c0_58] : memref<8x8x1xi32, #tpu.memory_space<vmem>>, vector<1x8x1xi32>
    %161 = vector.shape_cast %160 : vector<1x8x1xi32> to vector<8x1xi32>
    %162 = arith.index_cast %c5_i32 : i32 to index
    %c0_59 = arith.constant 0 : index
    %c0_60 = arith.constant 0 : index
    %163 = vector.load %arg2[%162, %c0_59, %c0_60] : memref<8x8x1xi32, #tpu.memory_space<vmem>>, vector<1x8x1xi32>
    %164 = vector.shape_cast %163 : vector<1x8x1xi32> to vector<8x1xi32>
    %165 = vector.shape_cast %161 : vector<8x1xi32> to vector<8x1xi32>
    %166 = vector.broadcast %165 : vector<8x1xi32> to vector<8x64xi32>
    %167 = vector.shape_cast %164 : vector<8x1xi32> to vector<8x1xi32>
    %168 = vector.broadcast %167 : vector<8x1xi32> to vector<8x64xi32>
    %169 = arith.select %14, %166, %168 : vector<8x64xi1>, vector<8x64xi32>
    %170 = arith.cmpi eq, %169, %17 : vector<8x64xi32>
    %171 = arith.extui %170 : vector<8x64xi1> to vector<8x64xi32>
    %172 = arith.sitofp %171 : vector<8x64xi32> to vector<8x64xf32>
    %173 = tpu.concatenate %172, %148 in 1 : vector<8x64xf32>, vector<8x64xf32> -> vector<8x128xf32>
    %cst_61 = arith.constant dense<0.000000e+00> : vector<8x64xf32>
    %174 = tpu.matmul %173, %0, %cst_61 {dimension_numbers = #tpu.dot_dimension_numbers<[1], [0], [0], [1], [0, 0, 1, 1], [], []>} : vector<8x128xf32>, vector<128x64xf32>, vector<8x64xf32> -> vector<8x64xf32>
    %175 = arith.addf %174, %5 : vector<8x64xf32>
    %176 = math.tanh %175 : vector<8x64xf32>
    %177 = tpu.concatenate %176, %152 in 1 : vector<8x64xf32>, vector<8x64xf32> -> vector<8x128xf32>
    %cst_62 = arith.constant dense<0.000000e+00> : vector<8x64xf32>
    %178 = tpu.matmul %177, %1, %cst_62 {dimension_numbers = #tpu.dot_dimension_numbers<[1], [0], [0], [1], [0, 0, 1, 1], [], []>} : vector<8x128xf32>, vector<128x64xf32>, vector<8x64xf32> -> vector<8x64xf32>
    %179 = arith.addf %178, %8 : vector<8x64xf32>
    %180 = math.tanh %179 : vector<8x64xf32>
    %cst_63 = arith.constant dense<0.000000e+00> : vector<8x128xf32>
    %181 = tpu.matmul %180, %2, %cst_63 {dimension_numbers = #tpu.dot_dimension_numbers<[1], [0], [0], [1], [0, 0, 1, 1], [], []>} : vector<8x64xf32>, vector<64x128xf32>, vector<8x128xf32> -> vector<8x128xf32>
    %182 = arith.addf %181, %11 : vector<8x128xf32>
    %183 = arith.index_cast %c5_i32 : i32 to index
    %c0_64 = arith.constant 0 : index
    %c0_65 = arith.constant 0 : index
    %184 = vector.load %arg9[%183, %c0_64, %c0_65] : memref<8x8x128xf32, #tpu.memory_space<vmem>>, vector<1x8x128xf32>
    %185 = vector.shape_cast %184 : vector<1x8x128xf32> to vector<8x128xf32>
    %186 = vector.shape_cast %182 : vector<8x128xf32> to vector<1x8x128xf32>
    tpu.vector_store %arg9[%183, %c0_64, %c0_65], %186 {strides = array<i32>} : memref<8x8x128xf32, #tpu.memory_space<vmem>>, vector<1x8x128xf32>,
    %c6_i32 = arith.constant 6 : i32
    %187 = arith.index_cast %c6_i32 : i32 to index
    %c0_66 = arith.constant 0 : index
    %c0_67 = arith.constant 0 : index
    %188 = vector.load %arg1[%187, %c0_66, %c0_67] : memref<8x8x1xi32, #tpu.memory_space<vmem>>, vector<1x8x1xi32>
    %189 = vector.shape_cast %188 : vector<1x8x1xi32> to vector<8x1xi32>
    %190 = arith.index_cast %c6_i32 : i32 to index
    %c0_68 = arith.constant 0 : index
    %c0_69 = arith.constant 0 : index
    %191 = vector.load %arg2[%190, %c0_68, %c0_69] : memref<8x8x1xi32, #tpu.memory_space<vmem>>, vector<1x8x1xi32>
    %192 = vector.shape_cast %191 : vector<1x8x1xi32> to vector<8x1xi32>
    %193 = vector.shape_cast %189 : vector<8x1xi32> to vector<8x1xi32>
    %194 = vector.broadcast %193 : vector<8x1xi32> to vector<8x64xi32>
    %195 = vector.shape_cast %192 : vector<8x1xi32> to vector<8x1xi32>
    %196 = vector.broadcast %195 : vector<8x1xi32> to vector<8x64xi32>
    %197 = arith.select %14, %194, %196 : vector<8x64xi1>, vector<8x64xi32>
    %198 = arith.cmpi eq, %197, %17 : vector<8x64xi32>
    %199 = arith.extui %198 : vector<8x64xi1> to vector<8x64xi32>
    %200 = arith.sitofp %199 : vector<8x64xi32> to vector<8x64xf32>
    %201 = tpu.concatenate %200, %176 in 1 : vector<8x64xf32>, vector<8x64xf32> -> vector<8x128xf32>
    %cst_70 = arith.constant dense<0.000000e+00> : vector<8x64xf32>
    %202 = tpu.matmul %201, %0, %cst_70 {dimension_numbers = #tpu.dot_dimension_numbers<[1], [0], [0], [1], [0, 0, 1, 1], [], []>} : vector<8x128xf32>, vector<128x64xf32>, vector<8x64xf32> -> vector<8x64xf32>
    %203 = arith.addf %202, %5 : vector<8x64xf32>
    %204 = math.tanh %203 : vector<8x64xf32>
    %205 = tpu.concatenate %204, %180 in 1 : vector<8x64xf32>, vector<8x64xf32> -> vector<8x128xf32>
    %cst_71 = arith.constant dense<0.000000e+00> : vector<8x64xf32>
    %206 = tpu.matmul %205, %1, %cst_71 {dimension_numbers = #tpu.dot_dimension_numbers<[1], [0], [0], [1], [0, 0, 1, 1], [], []>} : vector<8x128xf32>, vector<128x64xf32>, vector<8x64xf32> -> vector<8x64xf32>
    %207 = arith.addf %206, %8 : vector<8x64xf32>
    %208 = math.tanh %207 : vector<8x64xf32>
    %cst_72 = arith.constant dense<0.000000e+00> : vector<8x128xf32>
    %209 = tpu.matmul %208, %2, %cst_72 {dimension_numbers = #tpu.dot_dimension_numbers<[1], [0], [0], [1], [0, 0, 1, 1], [], []>} : vector<8x64xf32>, vector<64x128xf32>, vector<8x128xf32> -> vector<8x128xf32>
    %210 = arith.addf %209, %11 : vector<8x128xf32>
    %211 = arith.index_cast %c6_i32 : i32 to index
    %c0_73 = arith.constant 0 : index
    %c0_74 = arith.constant 0 : index
    %212 = vector.load %arg9[%211, %c0_73, %c0_74] : memref<8x8x128xf32, #tpu.memory_space<vmem>>, vector<1x8x128xf32>
    %213 = vector.shape_cast %212 : vector<1x8x128xf32> to vector<8x128xf32>
    %214 = vector.shape_cast %210 : vector<8x128xf32> to vector<1x8x128xf32>
    tpu.vector_store %arg9[%211, %c0_73, %c0_74], %214 {strides = array<i32>} : memref<8x8x128xf32, #tpu.memory_space<vmem>>, vector<1x8x128xf32>,
    %c7_i32 = arith.constant 7 : i32
    %215 = arith.index_cast %c7_i32 : i32 to index
    %c0_75 = arith.constant 0 : index
    %c0_76 = arith.constant 0 : index
    %216 = vector.load %arg1[%215, %c0_75, %c0_76] : memref<8x8x1xi32, #tpu.memory_space<vmem>>, vector<1x8x1xi32>
    %217 = vector.shape_cast %216 : vector<1x8x1xi32> to vector<8x1xi32>
    %218 = arith.index_cast %c7_i32 : i32 to index
    %c0_77 = arith.constant 0 : index
    %c0_78 = arith.constant 0 : index
    %219 = vector.load %arg2[%218, %c0_77, %c0_78] : memref<8x8x1xi32, #tpu.memory_space<vmem>>, vector<1x8x1xi32>
    %220 = vector.shape_cast %219 : vector<1x8x1xi32> to vector<8x1xi32>
    %221 = vector.shape_cast %217 : vector<8x1xi32> to vector<8x1xi32>
    %222 = vector.broadcast %221 : vector<8x1xi32> to vector<8x64xi32>
    %223 = vector.shape_cast %220 : vector<8x1xi32> to vector<8x1xi32>
    %224 = vector.broadcast %223 : vector<8x1xi32> to vector<8x64xi32>
    %225 = arith.select %14, %222, %224 : vector<8x64xi1>, vector<8x64xi32>
    %226 = arith.cmpi eq, %225, %17 : vector<8x64xi32>
    %227 = arith.extui %226 : vector<8x64xi1> to vector<8x64xi32>
    %228 = arith.sitofp %227 : vector<8x64xi32> to vector<8x64xf32>
    %229 = tpu.concatenate %228, %204 in 1 : vector<8x64xf32>, vector<8x64xf32> -> vector<8x128xf32>
    %cst_79 = arith.constant dense<0.000000e+00> : vector<8x64xf32>
    %230 = tpu.matmul %229, %0, %cst_79 {dimension_numbers = #tpu.dot_dimension_numbers<[1], [0], [0], [1], [0, 0, 1, 1], [], []>} : vector<8x128xf32>, vector<128x64xf32>, vector<8x64xf32> -> vector<8x64xf32>
    %231 = arith.addf %230, %5 : vector<8x64xf32>
    %232 = math.tanh %231 : vector<8x64xf32>
    %233 = tpu.concatenate %232, %208 in 1 : vector<8x64xf32>, vector<8x64xf32> -> vector<8x128xf32>
    %cst_80 = arith.constant dense<0.000000e+00> : vector<8x64xf32>
    %234 = tpu.matmul %233, %1, %cst_80 {dimension_numbers = #tpu.dot_dimension_numbers<[1], [0], [0], [1], [0, 0, 1, 1], [], []>} : vector<8x128xf32>, vector<128x64xf32>, vector<8x64xf32> -> vector<8x64xf32>
    %235 = arith.addf %234, %8 : vector<8x64xf32>
    %236 = math.tanh %235 : vector<8x64xf32>
    %cst_81 = arith.constant dense<0.000000e+00> : vector<8x128xf32>
    %237 = tpu.matmul %236, %2, %cst_81 {dimension_numbers = #tpu.dot_dimension_numbers<[1], [0], [0], [1], [0, 0, 1, 1], [], []>} : vector<8x64xf32>, vector<64x128xf32>, vector<8x128xf32> -> vector<8x128xf32>
    %238 = arith.addf %237, %11 : vector<8x128xf32>
    %239 = arith.index_cast %c7_i32 : i32 to index
    %c0_82 = arith.constant 0 : index
    %c0_83 = arith.constant 0 : index
    %240 = vector.load %arg9[%239, %c0_82, %c0_83] : memref<8x8x128xf32, #tpu.memory_space<vmem>>, vector<1x8x128xf32>
    %241 = vector.shape_cast %240 : vector<1x8x128xf32> to vector<8x128xf32>
    %242 = vector.shape_cast %238 : vector<8x128xf32> to vector<1x8x128xf32>
    tpu.vector_store %arg9[%239, %c0_82, %c0_83], %242 {strides = array<i32>} : memref<8x8x128xf32, #tpu.memory_space<vmem>>, vector<1x8x128xf32>,
    %c8_i32 = arith.constant 8 : i32
    return
  }
  func.func @transform_0(%arg0: i32) -> (i32, i32, i32) {
    %c0_i32 = arith.constant 0 : i32
    %c0_i32_0 = arith.constant 0 : i32
    %c0_i32_1 = arith.constant 0 : i32
    %c0_i32_2 = arith.constant 0 : i32
    return %c0_i32, %c0_i32_0, %c0_i32_1 : i32, i32, i32
  }
  func.func @transform_1(%arg0: i32) -> (i32, i32, i32) {
    %c0_i32 = arith.constant 0 : i32
    %c0_i32_0 = arith.constant 0 : i32
    %c0_i32_1 = arith.constant 0 : i32
    %c0_i32_2 = arith.constant 0 : i32
    return %c0_i32, %c0_i32_0, %c0_i32_1 : i32, i32, i32
  }
  func.func @transform_2(%arg0: i32) -> (i32, i32) {
    %c0_i32 = arith.constant 0 : i32
    %c0_i32_0 = arith.constant 0 : i32
    %c0_i32_1 = arith.constant 0 : i32
    return %c0_i32, %c0_i32_0 : i32, i32
  }
  func.func @transform_3(%arg0: i32) -> (i32, i32) {
    %c0_i32 = arith.constant 0 : i32
    %c0_i32_0 = arith.constant 0 : i32
    %c0_i32_1 = arith.constant 0 : i32
    return %c0_i32, %c0_i32_0 : i32, i32
  }
  func.func @transform_4(%arg0: i32) -> (i32, i32) {
    %c0_i32 = arith.constant 0 : i32
    %c0_i32_0 = arith.constant 0 : i32
    %c0_i32_1 = arith.constant 0 : i32
    return %c0_i32, %c0_i32_0 : i32, i32
  }
  func.func @transform_5(%arg0: i32) -> (i32, i32) {
    %c0_i32 = arith.constant 0 : i32
    %c0_i32_0 = arith.constant 0 : i32
    %c0_i32_1 = arith.constant 0 : i32
    return %c0_i32, %c0_i32_0 : i32, i32
  }
  func.func @transform_6(%arg0: i32) -> (i32, i32) {
    %c0_i32 = arith.constant 0 : i32
    %c0_i32_0 = arith.constant 0 : i32
    %c0_i32_1 = arith.constant 0 : i32
    return %c0_i32, %c0_i32_0 : i32, i32
  }
  func.func @transform_7(%arg0: i32) -> (i32, i32) {
    %c0_i32 = arith.constant 0 : i32
    %c0_i32_0 = arith.constant 0 : i32
    %c0_i32_1 = arith.constant 0 : i32
    return %c0_i32, %c0_i32_0 : i32, i32
  }
  func.func @transform_8(%arg0: i32) -> (i32, i32, i32) {
    %c0_i32 = arith.constant 0 : i32
    %c0_i32_0 = arith.constant 0 : i32
    %c0_i32_1 = arith.constant 0 : i32
    %c0_i32_2 = arith.constant 0 : i32
    return %c0_i32, %c0_i32_0, %c0_i32_1 : i32, i32, i32
  }
}

</mosaic_0001>

<bundles_post_ra>
// kernel: model_forward.1
= control target key start
LH: loop header
LB: loop body
LE: loop exit
PB: predicated region body
PF: predicated region fallthrough
CT: control target
= control target key end

     0   :  { %v3190_v0 = vmov 0   ;;  %v3191_v2 = vmov 0.0   ;;  %vm3192_vm0 = vmmov 0   ;;  %v90_v28 = vlaneseq  ;;  %s3193_s13 = smov 64   ;;  %s4532_s0 = inlined_call_operand.vmem [shape: s32[8,8,1], index: 0, kind: input, shape index: {}]   ;;  %s4533_s1 = inlined_call_operand.vmem [shape: s32[8,8,1], index: 1, kind: input, shape index: {}]   ;;  %s4534_s2 = inlined_call_operand.vmem [shape: f32[128,64], index: 2, kind: input, shape index: {}]   ;;  %s4535_s4 = inlined_call_operand.vmem [shape: f32[128,64], index: 4, kind: input, shape index: {}]   ;;  %s4536_s3 = inlined_call_operand.vmem [shape: f32[1,64], index: 3, kind: input, shape index: {}]   ;;  %s4537_s6 = inlined_call_operand.vmem [shape: f32[64,128], index: 6, kind: input, shape index: {}]   ;;  %s4538_s5 = inlined_call_operand.vmem [shape: f32[1,64], index: 5, kind: input, shape index: {}]   ;;  %s4539_s7 = inlined_call_operand.vmem [shape: f32[1,128], index: 7, kind: input, shape index: {}]   ;;  %s4540_s8 = inlined_call_operand.vmem [shape: f32[8,8,128], index: 8, kind: output, shape index: {}]  }
   0x1   :  { %3113 = vset.pattern.permute.xlu0 %v3190_v0  ;;  %v95_v1 = vld [vmem:[%s4532_s0] sm:$0xff]  ;;  %2397 = vmatprep.subr.mxu0 %v3191_v2  ;;  %v3246_v3 = vld [vmem:[%s4534_s2 + $0x78] sm:$0xff]  ;;  %v3252_v4 = vld [vmem:[%s4534_s2 + $0x70] sm:$0xff]  ;;  %vm107_vm2 = vcmask 523264  }
   0x2   :  { %98 = vperm.xlu0 %3113, %v95_v1   ;;  %2398 = vmatpush3.msra.mxu0 %v3246_v3  ;;  %v96_v5 = vld [vmem:[%s4533_s1] sm:$0xff]  ;;  %v3261_v6 = vld [vmem:[%s4534_s2 + $0x68] sm:$0xff]  ;;  %v3278_v8 = vld [vmem:[%s4534_s2 + $0x58] sm:$0xff]  ;;  %v3415_v29 = vand.u32 127, %v90_v28 }
   0x3   :  { %2399 = vmatprep.subr.mxu0 %v3191_v2  ;;  %2432 = vmatprep.subr.mxu1 %v3191_v2  ;;  %v3271_v7 = vld [vmem:[%s4534_s2 + $0x60] sm:$0xff]  ;;  %v3283_v9 = vld [vmem:[%s4535_s4 + $0x78] sm:$0xff]  ;;  %v3288_v10 = vld [vmem:[%s4535_s4 + $0x70] sm:$0xff] }
   0x4   :  { %2400 = vmatpush3.msra.mxu0 %v3252_v4  ;;  %2429 = vmatprep.mubr.msk.f32.mxu0 %vm3192_vm0, %v3191_v2  ;;  %v3298_v11 = vld [vmem:[%s4534_s2 + $0x50] sm:$0xff]  ;;  %v3304_v12 = vld [vmem:[%s4535_s4 + $0x68] sm:$0xff]  ;;  %v3318_v14 = vld [vmem:[%s4535_s4 + $0x60] sm:$0xff]  ;;  %v2013_v30 = vadd.s32 4294967264, %v3415_v29  ;;  %vm92_vm1 = vcmp.lt.s32.totalorder %v3415_v29, 32 }
   0x5   :  { %2401 = vmatprep.subr.mxu0 %v3191_v2  ;;  %3114 = vset.pattern.permute.xlu1 %v3190_v0  ;;  %v3312_v13 = vld [vmem:[%s4534_s2 + $0x48] sm:$0xff]  ;;  %v3326_v15 = vld [vmem:[%s4534_s2 + $0x40] sm:$0xff]  ;;  %v3332_v16 = vld [vmem:[%s4535_s4 + $0x58] sm:$0xff] }
   0x6   :  { %101 = vperm.xlu0 %3113, %v96_v5   ;;  %2402 = vmatpush3.msra.mxu0 %v3261_v6  ;;  %v3340_v17 = vld [vmem:[%s4534_s2 + $0x38] sm:$0xff]  ;;  %v3346_v18 = vld [vmem:[%s4535_s4 + $0x50] sm:$0xff]  ;;  %v2018_v20 = vld [vmem:[%s4532_s0 + $0x8] sm:$0xff]  ;;  %v3422_v32 = vsel %vm92_vm1, %v3415_v29, %v2013_v30 }
   0x7   :  { %2403 = vmatprep.subr.mxu0 %v3191_v2  ;;  %2464 = vmatprep.mubr.msk.f32.mxu1 %vm3192_vm0, %v3191_v2  ;;  %v3354_v19 = vld [vmem:[%s4534_s2 + $0x30] sm:$0xff]  ;;  %v3365_v21 = vld [vmem:[%s4535_s4 + $0x48] sm:$0xff]  ;;  %v3379_v23 = vld [vmem:[%s4534_s2 + $0x20] sm:$0xff] }
   0x8   :  { %2404 = vmatpush3.msra.mxu0 %v3271_v7  ;;  %2433 = vmatpush3.msra.mxu1 %v3283_v9  ;;  %v3371_v22 = vld [vmem:[%s4534_s2 + $0x28] sm:$0xff]  ;;  %v3388_v24 = vld [vmem:[%s4534_s2 + $0x18] sm:$0xff]  ;;  %v3395_v25 = vld [vmem:[%s4534_s2 + $0x10] sm:$0xff] }
   0x9   :  { %2405 = vmatprep.subr.mxu0 %v3191_v2  ;;  %2434 = vmatprep.subr.mxu1 %v3191_v2  ;;  %v3402_v26 = vld [vmem:[%s4534_s2 + $0x8] sm:$0xff]  ;;  %v3409_v27 = vld [vmem:[%s4534_s2] sm:$0xff]  ;;  %v3444_v38 = vld [vmem:[%s4535_s4 + $0x38] sm:$0xff] }
   0xa   :  { %2406 = vmatpush3.msra.mxu0 %v3278_v8  ;;  %2435 = vmatpush3.msra.mxu1 %v3288_v10  ;;  %v3434_v36 = vld [vmem:[%s4535_s4 + $0x40] sm:$0xff]  ;;  %v2019_v37 = vld [vmem:[%s4533_s1 + $0x8] sm:$0xff]  ;;  %v3451_v39 = vld [vmem:[%s4535_s4 + $0x30] sm:$0xff] }
   0xb   :  { %2407 = vmatprep.subr.mxu0 %v3191_v2  ;;  %2436 = vmatprep.subr.mxu1 %v3191_v2  ;;  %v3456_v40 = vld [vmem:[%s4535_s4 + $0x28] sm:$0xff]  ;;  %v3463_v41 = vld [vmem:[%s4535_s4 + $0x20] sm:$0xff]  ;;  %v3470_v42 = vld [vmem:[%s4535_s4 + $0x18] sm:$0xff] }
   0xc   :  { %2408 = vmatpush3.msra.mxu0 %v3298_v11  ;;  %2437 = vmatpush3.msra.mxu1 %v3304_v12  ;;  %v3477_v43 = vld [vmem:[%s4535_s4 + $0x10] sm:$0xff]  ;;  %v3484_v44 = vld [vmem:[%s4535_s4 + $0x8] sm:$0xff]  ;;  %v3491_v45 = vld [vmem:[%s4535_s4] sm:$0xff] }
   0xd   :  { %2409 = vmatprep.subr.mxu0 %v3191_v2  ;;  %2438 = vmatprep.subr.mxu1 %v3191_v2  ;;  %v3500_v46 = vld [vmem:[%s4536_s3] ss:$0 sm:$0xff]  ;;  %v2023_v51 = vld [vmem:[%s4532_s0 + $0x10] sm:$0xff]  ;;  %v3545_v52 = vld [vmem:[%s4537_s6 + $0x38] sm:$0xff] }
   0xe   :  { %2410 = vmatpush3.msra.mxu0 %v3312_v13  ;;  %2439 = vmatpush3.msra.mxu1 %v3318_v14  ;;  %v3552_v53 = vld [vmem:[%s4537_s6 + $0x30] sm:$0xff]  ;;  %v3557_v54 = vld [vmem:[%s4537_s6 + $0x28] sm:$0xff]  ;;  %v3564_v55 = vld [vmem:[%s4537_s6 + $0x20] sm:$0xff] }
   0xf   :  { %2411 = vmatprep.subr.mxu0 %v3191_v2  ;;  %2440 = vmatprep.subr.mxu1 %v3191_v2  ;;  %v3571_v56 = vld [vmem:[%s4537_s6 + $0x18] sm:$0xff]  ;;  %v3578_v57 = vld [vmem:[%s4537_s6 + $0x10] sm:$0xff]  ;;  %v3585_v58 = vld [vmem:[%s4537_s6 + $0x8] sm:$0xff] }
  0x10   :  { %2412 = vmatpush3.msra.mxu0 %v3326_v15  ;;  %2441 = vmatpush3.msra.mxu1 %v3332_v16  ;;  %v3592_v59 = vld [vmem:[%s4537_s6] sm:$0xff] }
  0x11   :  { %2413 = vmatprep.subr.mxu0 %v3191_v2  ;;  %2442 = vmatprep.subr.mxu1 %v3191_v2  ;;  %v3624_v5 = vld [vmem:[%s4538_s5] ss:$0 sm:$0xff] }
  0x12   :  { %2414 = vmatpush3.msra.mxu0 %v3340_v17  ;;  %2443 = vmatpush3.msra.mxu1 %v3346_v18 }
  0x13   :  { %2415 = vmatprep.subr.mxu0 %v3191_v2  ;;  %2444 = vmatprep.subr.mxu1 %v3191_v2 }
  0x14   :  { %2416 = vmatpush3.msra.mxu0 %v3354_v19  ;;  %331 = vperm.xlu1 %3114, %v2018_v20  }
  0x15   :  { %2417 = vmatprep.subr.mxu0 %v3191_v2  ;;  %2445 = vmatpush3.msra.mxu1 %v3365_v21 }
  0x16   :  { %2418 = vmatpush3.msra.mxu0 %v3371_v22  ;;  %2446 = vmatprep.subr.mxu1 %v3191_v2 }
  0x17   :  { %2419 = vmatprep.subr.mxu0 %v3191_v2  ;;  %2447 = vmatpush3.msra.mxu1 %v3434_v36 }
  0x18   :  { %2420 = vmatpush3.msra.mxu0 %v3379_v23  ;;  %2448 = vmatprep.subr.mxu1 %v3191_v2 }
  0x19   :  { %2421 = vmatprep.subr.mxu0 %v3191_v2  ;;  %334 = vperm.xlu1 %3114, %v2019_v37  }
  0x1a   :  { %2422 = vmatpush3.msra.mxu0 %v3388_v24  ;;  %2449 = vmatpush3.msra.mxu1 %v3444_v38 }
  0x1b   :  { %2423 = vmatprep.subr.mxu0 %v3191_v2  ;;  %2450 = vmatprep.subr.mxu1 %v3191_v2 }
  0x1c   :  { %2424 = vmatpush3.msra.mxu0 %v3395_v25  ;;  %2451 = vmatpush3.msra.mxu1 %v3451_v39 }
  0x1d   :  { %2425 = vmatprep.subr.mxu0 %v3191_v2  ;;  %2452 = vmatprep.subr.mxu1 %v3191_v2 }
  0x1e   :  { %2426 = vmatpush3.msra.mxu0 %v3402_v26  ;;  %2453 = vmatpush3.msra.mxu1 %v3456_v40 }
  0x1f   :  { %2427 = vmatprep.subr.mxu0 %v3191_v2  ;;  %2454 = vmatprep.subr.mxu1 %v3191_v2 }
  0x20   :  { %2428 = vmatpush3.msra.mxu0 %v3409_v27  ;;  %2455 = vmatpush3.msra.mxu1 %v3463_v41 }
  0x21   :  { %2467 = vmatprep.subr.mxu0 %v3191_v2  ;;  %2456 = vmatprep.subr.mxu1 %v3191_v2 }
  0x22   :  { %2457 = vmatpush3.msra.mxu1 %v3470_v42 }
  0x23   :  { %2458 = vmatprep.subr.mxu1 %v3191_v2 }
  0x24   :  { %2459 = vmatpush3.msra.mxu1 %v3477_v43 }
  0x25   :  { %2460 = vmatprep.subr.mxu1 %v3191_v2 }
  0x26   :  { %2461 = vmatpush3.msra.mxu1 %v3484_v44 }
  0x27   :  { %2462 = vmatprep.subr.mxu1 %v3191_v2 }
  0x28   :  { %2463 = vmatpush3.msra.mxu1 %v3491_v45 }
  0x29   :  { %2486 = vmatprep.subr.mxu1 %v3191_v2 }
  0x7d   :  { %v99_v31 = vpop.permute.xlu0 %98 }
  0x81   :  { %v102_v33 = vpop.permute.xlu0 %101 }
  0x82   :  { %v103_v34 = vsel %vm92_vm1, %v99_v31, %v102_v33  ;;  %v2024_v33 = vld [vmem:[%s4533_s1 + $0x10] sm:$0xff] }
  0x83   :  { %vm104_vm3 = vcmp.eq.s32.totalorder %v103_v34, %v3422_v32 }
  0x84   :  { %v2014_v35 = vsel %vm104_vm3, 1.0, %v3191_v2 }
  0x85   :  { %2430 = vmatmul.mubr.msk.f32.vlgmr.msra.gmra.mxu0 %vm107_vm2, %v2014_v35 }
  0x86   :  { %2483 = vmatprep.mubr.msk.f32.mxu0 %vm3192_vm0, %v3191_v2  ;;  %2468 = vmatpush3.msra.mxu0 %v3545_v52 }
  0x87   :  { %2469 = vmatprep.subr.mxu0 %v3191_v2 }
  0x88   :  { %2470 = vmatpush3.msra.mxu0 %v3552_v53 }
  0x89   :  { %2471 = vmatprep.subr.mxu0 %v3191_v2 }
  0x8a   :  { %2472 = vmatpush3.msra.mxu0 %v3557_v54 }
  0x8b   :  { %2473 = vmatprep.subr.mxu0 %v3191_v2 }
  0x8c   :  { %2474 = vmatpush3.msra.mxu0 %v3564_v55 }
  0x8d   :  { %2475 = vmatprep.subr.mxu0 %v3191_v2 }
  0x8e   :  { %2476 = vmatpush3.msra.mxu0 %v3571_v56 }
  0x8f   :  { %2477 = vmatprep.subr.mxu0 %v3191_v2  ;;  %v332_v60 = vpop.permute.xlu1 %331 }
  0x90   :  { %2478 = vmatpush3.msra.mxu0 %v3578_v57 }
  0x91   :  { %2479 = vmatprep.subr.mxu0 %v3191_v2 }
  0x92   :  { %2480 = vmatpush3.msra.mxu0 %v3585_v58 }
  0x93   :  { %2481 = vmatprep.subr.mxu0 %v3191_v2 }
  0x94   :  { %2482 = vmatpush3.msra.mxu0 %v3592_v59  ;;  %v335_v61 = vpop.permute.xlu1 %334 }
  0x95   :  { %2521 = vmatprep.subr.mxu0 %v3191_v2  ;;  %v336_v62 = vsel %vm92_vm1, %v332_v60, %v335_v61 }
  0x96   :  { %vm337_vm4 = vcmp.eq.s32.totalorder %v336_v62, %v3422_v32 }
  0x97   :  { %v2020_v63 = vsel %vm337_vm4, 1.0, %v3191_v2 }
 0x145   :  { %v175_v47 = vpop.f32.mrf.mxu0 }
 0x146   :  { %v176_v48 = vadd.f32 %v3500_v46, %v175_v47 }
 0x147   :  { %v2431_v49 = vpop.f32.mrf.mxu0 }
 0x148   :  { %3115 = vtanh.f32 %v176_v48 }
 0x155   :  { %v3116_v50 = vpop.eup %3115 }
 0x156   :  { %341 = vrot.lane.b32.xlu0 %v3116_v50, %s3193_s13  ;;  %2465 = vmatmul.mubr.msk.f32.vlgmr.msra.gmra.mxu1 %vm107_vm2, %v3116_v50  ;;  %v2028_v50 = vld [vmem:[%s4532_s0 + $0x18] sm:$0xff] }
 0x157   :  { %2487 = vmatpush3.msra.mxu1 %v3246_v3  ;;  %2518 = vmatprep.mubr.msk.f32.mxu1 %vm3192_vm0, %v3191_v2 }
 0x158   :  { %2488 = vmatprep.subr.mxu1 %v3191_v2 }
 0x159   :  { %2489 = vmatpush3.msra.mxu1 %v3252_v4 }
 0x15a   :  { %571 = vperm.xlu0 %3113, %v2023_v51   ;;  %2490 = vmatprep.subr.mxu1 %v3191_v2  ;;  %v3709_v51 = vld [vmem:[%s4539_s7] ss:$0 sm:$0xff] }
 0x15b   :  { %2491 = vmatpush3.msra.mxu1 %v3261_v6 }
 0x15c   :  { %2492 = vmatprep.subr.mxu1 %v3191_v2 }
 0x15d   :  { %2493 = vmatpush3.msra.mxu1 %v3271_v7 }
 0x15e   :  { %2494 = vmatprep.subr.mxu1 %v3191_v2 }
 0x15f   :  { %2495 = vmatpush3.msra.mxu1 %v3278_v8 }
 0x160   :  { %2496 = vmatprep.subr.mxu1 %v3191_v2 }
 0x161   :  { %2497 = vmatpush3.msra.mxu1 %v3298_v11 }
 0x162   :  { %2498 = vmatprep.subr.mxu1 %v3191_v2 }
 0x163   :  { %2499 = vmatpush3.msra.mxu1 %v3312_v13 }
 0x164   :  { %2500 = vmatprep.subr.mxu1 %v3191_v2 }
 0x165   :  { %2501 = vmatpush3.msra.mxu1 %v3326_v15 }
 0x166   :  { %2502 = vmatprep.subr.mxu1 %v3191_v2 }
 0x167   :  { %2503 = vmatpush3.msra.mxu1 %v3340_v17 }
 0x168   :  { %2504 = vmatprep.subr.mxu1 %v3191_v2 }
 0x169   :  { %2505 = vmatpush3.msra.mxu1 %v3354_v19 }
 0x16a   :  { %2506 = vmatprep.subr.mxu1 %v3191_v2 }
 0x16b   :  { %2507 = vmatpush3.msra.mxu1 %v3371_v22 }
 0x16c   :  { %2508 = vmatprep.subr.mxu1 %v3191_v2 }
 0x16d   :  { %2509 = vmatpush3.msra.mxu1 %v3379_v23 }
 0x16e   :  { %2510 = vmatprep.subr.mxu1 %v3191_v2 }
 0x16f   :  { %2511 = vmatpush3.msra.mxu1 %v3388_v24 }
 0x170   :  { %2512 = vmatprep.subr.mxu1 %v3191_v2 }
 0x171   :  { %2513 = vmatpush3.msra.mxu1 %v3395_v25 }
 0x172   :  { %2514 = vmatprep.subr.mxu1 %v3191_v2 }
 0x173   :  { %2515 = vmatpush3.msra.mxu1 %v3402_v26 }
 0x174   :  { %2516 = vmatprep.subr.mxu1 %v3191_v2 }
 0x175   :  { %2517 = vmatpush3.msra.mxu1 %v3409_v27 }
 0x176   :  { %2556 = vmatprep.subr.mxu1 %v3191_v2 }
 0x1c8   :  { %v342_v0 = vpop.permute.xlu0 %341 }
 0x1c9   :  { %v344_v1 = vsel %vm107_vm2, %v2020_v63, %v342_v0 }
 0x1ca   :  { %2519 = vmatmul.mubr.f32.vlgmr.msra.gmra.mxu1 %v344_v1 }
 0x1cb   :  { %2557 = vmatpush3.msra.mxu1 %v3545_v52  ;;  %2572 = vmatprep.mubr.msk.f32.mxu1 %vm3192_vm0, %v3191_v2 }
 0x1cc   :  { %2558 = vmatprep.subr.mxu1 %v3191_v2 }
 0x1cd   :  { %2559 = vmatpush3.msra.mxu1 %v3552_v53 }
 0x1ce   :  { %2560 = vmatprep.subr.mxu1 %v3191_v2 }
 0x1cf   :  { %2561 = vmatpush3.msra.mxu1 %v3557_v54 }
 0x1d0   :  { %2562 = vmatprep.subr.mxu1 %v3191_v2 }
 0x1d1   :  { %2563 = vmatpush3.msra.mxu1 %v3564_v55 }
 0x1d2   :  { %2564 = vmatprep.subr.mxu1 %v3191_v2 }
 0x1d3   :  { %2565 = vmatpush3.msra.mxu1 %v3571_v56 }
 0x1d4   :  { %2566 = vmatprep.subr.mxu1 %v3191_v2 }
 0x1d5   :  { %2567 = vmatpush3.msra.mxu1 %v3578_v57  ;;  %v572_v0 = vpop.permute.xlu0 %571 }
 0x1d6   :  { %2568 = vmatprep.subr.mxu1 %v3191_v2 }
 0x1d7   :  { %2569 = vmatpush3.msra.mxu1 %v3585_v58 }
 0x1d8   :  { %2570 = vmatprep.subr.mxu1 %v3191_v2 }
 0x1d9   :  { %2571 = vmatpush3.msra.mxu1 %v3592_v59 }
 0x1da   :  { %2610 = vmatprep.subr.mxu1 %v3191_v2 }
 0x216   :  { %v247_v20 = vpop.f32.mrf.mxu1 }
 0x217   :  { %v248_v28 = vadd.f32 %v3624_v5, %v247_v20 }
 0x218   :  { %v2466_v30 = vpop.f32.mrf.mxu1 }
 0x219   :  { %3117 = vtanh.f32 %v248_v28 }
 0x226   :  { %v3118_v31 = vpop.eup %3117 }
 0x227   :  { %416 = vrot.lane.b32.xlu1 %v3118_v31, %s3193_s13  ;;  %2484 = vmatmul.mubr.msk.f32.vlgmr.msra.gmra.mxu0 %vm107_vm2, %v3118_v31 }
 0x228   :  { %2522 = vmatpush3.msra.mxu0 %v3283_v9  ;;  %2553 = vmatprep.mubr.msk.f32.mxu0 %vm3192_vm0, %v3191_v2 }
 0x229   :  { %2523 = vmatprep.subr.mxu0 %v3191_v2 }
 0x22a   :  { %2524 = vmatpush3.msra.mxu0 %v3288_v10 }
 0x22b   :  { %574 = vperm.xlu1 %3114, %v2024_v33   ;;  %2525 = vmatprep.subr.mxu0 %v3191_v2 }
 0x22c   :  { %2526 = vmatpush3.msra.mxu0 %v3304_v12 }
 0x22d   :  { %2527 = vmatprep.subr.mxu0 %v3191_v2 }
 0x22e   :  { %2528 = vmatpush3.msra.mxu0 %v3318_v14 }
 0x22f   :  { %2529 = vmatprep.subr.mxu0 %v3191_v2 }
 0x230   :  { %2530 = vmatpush3.msra.mxu0 %v3332_v16 }
 0x231   :  { %2531 = vmatprep.subr.mxu0 %v3191_v2 }
 0x232   :  { %2532 = vmatpush3.msra.mxu0 %v3346_v18 }
 0x233   :  { %2533 = vmatprep.subr.mxu0 %v3191_v2 }
 0x234   :  { %2534 = vmatpush3.msra.mxu0 %v3365_v21 }
 0x235   :  { %2535 = vmatprep.subr.mxu0 %v3191_v2 }
 0x236   :  { %2536 = vmatpush3.msra.mxu0 %v3434_v36 }
 0x237   :  { %2537 = vmatprep.subr.mxu0 %v3191_v2 }
 0x238   :  { %2538 = vmatpush3.msra.mxu0 %v3444_v38 }
 0x239   :  { %2539 = vmatprep.subr.mxu0 %v3191_v2 }
 0x23a   :  { %2540 = vmatpush3.msra.mxu0 %v3451_v39 }
 0x23b   :  { %2541 = vmatprep.subr.mxu0 %v3191_v2 }
 0x23c   :  { %2542 = vmatpush3.msra.mxu0 %v3456_v40 }
 0x23d   :  { %2543 = vmatprep.subr.mxu0 %v3191_v2 }
 0x23e   :  { %2544 = vmatpush3.msra.mxu0 %v3463_v41 }
 0x23f   :  { %2545 = vmatprep.subr.mxu0 %v3191_v2 }
 0x240   :  { %2546 = vmatpush3.msra.mxu0 %v3470_v42 }
 0x241   :  { %2547 = vmatprep.subr.mxu0 %v3191_v2 }
 0x242   :  { %2548 = vmatpush3.msra.mxu0 %v3477_v43 }
 0x243   :  { %2549 = vmatprep.subr.mxu0 %v3191_v2 }
 0x244   :  { %2550 = vmatpush3.msra.mxu0 %v3484_v44 }
 0x245   :  { %2551 = vmatprep.subr.mxu0 %v3191_v2 }
 0x246   :  { %2552 = vmatpush3.msra.mxu0 %v3491_v45 }
 0x247   :  { %2575 = vmatprep.subr.mxu0 %v3191_v2 }
 0x28a   :  { %v411_v34 = vpop.f32.mrf.mxu1 }
 0x28b   :  { %v412_v35 = vadd.f32 %v3500_v46, %v411_v34 }
 0x28c   :  { %v2520_v37 = vpop.f32.mrf.mxu1 }
 0x28d   :  { %3119 = vtanh.f32 %v412_v35  ;;  %v2029_v37 = vld [vmem:[%s4533_s1 + $0x18] sm:$0xff] }
 0x299   :  { %v417_v47 = vpop.permute.xlu1 %416 }
 0x29a   :  { %v3120_v48 = vpop.eup %3119 }
 0x29b   :  { %v419_v49 = vsel %vm107_vm2, %v3120_v48, %v417_v47  ;;  %581 = vrot.lane.b32.xlu0 %v3120_v48, %s3193_s13 }
 0x29c   :  { %2554 = vmatmul.mubr.f32.vlgmr.msra.gmra.mxu0 %v419_v49 }
 0x29d   :  { %2576 = vmatpush3.msra.mxu0 %v3246_v3  ;;  %2607 = vmatprep.mubr.msk.f32.mxu0 %vm3192_vm0, %v3191_v2 }
 0x29e   :  { %2577 = vmatprep.subr.mxu0 %v3191_v2 }
 0x29f   :  { %811 = vperm.xlu0 %3113, %v2028_v50   ;;  %2578 = vmatpush3.msra.mxu0 %v3252_v4 }
 0x2a0   :  { %2579 = vmatprep.subr.mxu0 %v3191_v2 }
 0x2a1   :  { %2580 = vmatpush3.msra.mxu0 %v3261_v6 }
 0x2a2   :  { %2581 = vmatprep.subr.mxu0 %v3191_v2 }
 0x2a3   :  { %2582 = vmatpush3.msra.mxu0 %v3271_v7 }
 0x2a4   :  { %2583 = vmatprep.subr.mxu0 %v3191_v2 }
 0x2a5   :  { %2584 = vmatpush3.msra.mxu0 %v3278_v8 }
 0x2a6   :  { %2585 = vmatprep.subr.mxu0 %v3191_v2  ;;  %v575_v63 = vpop.permute.xlu1 %574 }
 0x2a7   :  { %2586 = vmatpush3.msra.mxu0 %v3298_v11  ;;  %v576_v1 = vsel %vm92_vm1, %v572_v0, %v575_v63 }
 0x2a8   :  { %2587 = vmatprep.subr.mxu0 %v3191_v2  ;;  %vm577_vm5 = vcmp.eq.s32.totalorder %v576_v1, %v3422_v32 }
 0x2a9   :  { %2588 = vmatpush3.msra.mxu0 %v3312_v13  ;;  %v2025_v20 = vsel %vm577_vm5, 1.0, %v3191_v2 }
 0x2aa   :  { %2589 = vmatprep.subr.mxu0 %v3191_v2 }
 0x2ab   :  { %2590 = vmatpush3.msra.mxu0 %v3326_v15 }
 0x2ac   :  { %2591 = vmatprep.subr.mxu0 %v3191_v2 }
 0x2ad   :  { %2592 = vmatpush3.msra.mxu0 %v3340_v17 }
 0x2ae   :  { %2593 = vmatprep.subr.mxu0 %v3191_v2 }
 0x2af   :  { %2594 = vmatpush3.msra.mxu0 %v3354_v19 }
 0x2b0   :  { %2595 = vmatprep.subr.mxu0 %v3191_v2 }
 0x2b1   :  { %2596 = vmatpush3.msra.mxu0 %v3371_v22 }
 0x2b2   :  { %2597 = vmatprep.subr.mxu0 %v3191_v2 }
 0x2b3   :  { %2598 = vmatpush3.msra.mxu0 %v3379_v23 }
 0x2b4   :  { %2599 = vmatprep.subr.mxu0 %v3191_v2 }
 0x2b5   :  { %2600 = vmatpush3.msra.mxu0 %v3388_v24 }
 0x2b6   :  { %2601 = vmatprep.subr.mxu0 %v3191_v2 }
 0x2b7   :  { %2602 = vmatpush3.msra.mxu0 %v3395_v25 }
 0x2b8   :  { %2603 = vmatprep.subr.mxu0 %v3191_v2 }
 0x2b9   :  { %2604 = vmatpush3.msra.mxu0 %v3402_v26 }
 0x2ba   :  { %2605 = vmatprep.subr.mxu0 %v3191_v2 }
 0x2bb   :  { %2606 = vmatpush3.msra.mxu0 %v3409_v27 }
 0x2bc   :  { %2645 = vmatprep.subr.mxu0 %v3191_v2 }
 0x2e7   :  { %v321_v60 = vpop.f32.mrf.mxu0 }
 0x2e8   :  { %v322_v61 = vadd.f32 %v3709_v51, %v321_v60 }
 0x2e9   :  { %v2485_v62 = vpop.f32.mrf.mxu0 }
 0x2ea   :  { %325 = vst [vmem:[%s4540_s8] sm:$0xff] %v322_v61  ;;  %v2033_v62 = vld [vmem:[%s4532_s0 + $0x20] sm:$0xff] }
 0x30d   :  { %v582_v28 = vpop.permute.xlu0 %581 }
 0x30e   :  { %v584_v30 = vsel %vm107_vm2, %v2025_v20, %v582_v28 }
 0x30f   :  { %2608 = vmatmul.mubr.f32.vlgmr.msra.gmra.mxu0 %v584_v30 }
 0x310   :  { %2646 = vmatpush3.msra.mxu0 %v3545_v52  ;;  %2661 = vmatprep.mubr.msk.f32.mxu0 %vm3192_vm0, %v3191_v2 }
 0x311   :  { %2647 = vmatprep.subr.mxu0 %v3191_v2 }
 0x312   :  { %2648 = vmatpush3.msra.mxu0 %v3552_v53 }
 0x313   :  { %2649 = vmatprep.subr.mxu0 %v3191_v2 }
 0x314   :  { %2650 = vmatpush3.msra.mxu0 %v3557_v54 }
 0x315   :  { %2651 = vmatprep.subr.mxu0 %v3191_v2 }
 0x316   :  { %2652 = vmatpush3.msra.mxu0 %v3564_v55 }
 0x317   :  { %2653 = vmatprep.subr.mxu0 %v3191_v2 }
 0x318   :  { %2654 = vmatpush3.msra.mxu0 %v3571_v56 }
 0x319   :  { %2655 = vmatprep.subr.mxu0 %v3191_v2 }
 0x31a   :  { %2656 = vmatpush3.msra.mxu0 %v3578_v57  ;;  %v812_v28 = vpop.permute.xlu0 %811 }
 0x31b   :  { %2657 = vmatprep.subr.mxu0 %v3191_v2 }
 0x31c   :  { %2658 = vmatpush3.msra.mxu0 %v3585_v58 }
 0x31d   :  { %2659 = vmatprep.subr.mxu0 %v3191_v2 }
 0x31e   :  { %2660 = vmatpush3.msra.mxu0 %v3592_v59 }
 0x31f   :  { %2699 = vmatprep.subr.mxu0 %v3191_v2 }
 0x35c   :  { %v486_v31 = vpop.f32.mrf.mxu0 }
 0x35d   :  { %v487_v33 = vadd.f32 %v3624_v5, %v486_v31 }
 0x35e   :  { %v2555_v34 = vpop.f32.mrf.mxu0 }
 0x35f   :  { %3121 = vtanh.f32 %v487_v33 }
 0x36c   :  { %v3122_v35 = vpop.eup %3121 }
 0x36d   :  { %656 = vrot.lane.b32.xlu1 %v3122_v35, %s3193_s13  ;;  %2573 = vmatmul.mubr.msk.f32.vlgmr.msra.gmra.mxu1 %vm107_vm2, %v3122_v35 }
 0x36e   :  { %2611 = vmatpush3.msra.mxu1 %v3283_v9  ;;  %2642 = vmatprep.mubr.msk.f32.mxu1 %vm3192_vm0, %v3191_v2 }
 0x36f   :  { %2612 = vmatprep.subr.mxu1 %v3191_v2 }
 0x370   :  { %2613 = vmatpush3.msra.mxu1 %v3288_v10 }
 0x371   :  { %814 = vperm.xlu1 %3114, %v2029_v37   ;;  %2614 = vmatprep.subr.mxu1 %v3191_v2 }
 0x372   :  { %2615 = vmatpush3.msra.mxu1 %v3304_v12 }
 0x373   :  { %2616 = vmatprep.subr.mxu1 %v3191_v2 }
 0x374   :  { %2617 = vmatpush3.msra.mxu1 %v3318_v14 }
 0x375   :  { %2618 = vmatprep.subr.mxu1 %v3191_v2 }
 0x376   :  { %2619 = vmatpush3.msra.mxu1 %v3332_v16 }
 0x377   :  { %2620 = vmatprep.subr.mxu1 %v3191_v2 }
 0x378   :  { %2621 = vmatpush3.msra.mxu1 %v3346_v18 }
 0x379   :  { %2622 = vmatprep.subr.mxu1 %v3191_v2 }
 0x37a   :  { %2623 = vmatpush3.msra.mxu1 %v3365_v21 }
 0x37b   :  { %2624 = vmatprep.subr.mxu1 %v3191_v2 }
 0x37c   :  { %2625 = vmatpush3.msra.mxu1 %v3434_v36 }
 0x37d   :  { %2626 = vmatprep.subr.mxu1 %v3191_v2 }
 0x37e   :  { %2627 = vmatpush3.msra.mxu1 %v3444_v38 }
 0x37f   :  { %2628 = vmatprep.subr.mxu1 %v3191_v2 }
 0x380   :  { %2629 = vmatpush3.msra.mxu1 %v3451_v39 }
 0x381   :  { %2630 = vmatprep.subr.mxu1 %v3191_v2 }
 0x382   :  { %2631 = vmatpush3.msra.mxu1 %v3456_v40 }
 0x383   :  { %2632 = vmatprep.subr.mxu1 %v3191_v2 }
 0x384   :  { %2633 = vmatpush3.msra.mxu1 %v3463_v41 }
 0x385   :  { %2634 = vmatprep.subr.mxu1 %v3191_v2 }
 0x386   :  { %2635 = vmatpush3.msra.mxu1 %v3470_v42 }
 0x387   :  { %2636 = vmatprep.subr.mxu1 %v3191_v2 }
 0x388   :  { %2637 = vmatpush3.msra.mxu1 %v3477_v43 }
 0x389   :  { %2638 = vmatprep.subr.mxu1 %v3191_v2 }
 0x38a   :  { %2639 = vmatpush3.msra.mxu1 %v3484_v44 }
 0x38b   :  { %2640 = vmatprep.subr.mxu1 %v3191_v2 }
 0x38c   :  { %2641 = vmatpush3.msra.mxu1 %v3491_v45 }
 0x38d   :  { %2664 = vmatprep.subr.mxu1 %v3191_v2 }
 0x3cf   :  { %v651_v47 = vpop.f32.mrf.mxu0 }
 0x3d0   :  { %v652_v48 = vadd.f32 %v3500_v46, %v651_v47 }
 0x3d1   :  { %v2609_v49 = vpop.f32.mrf.mxu0 }
 0x3d2   :  { %3123 = vtanh.f32 %v652_v48  ;;  %v2034_v49 = vld [vmem:[%s4533_s1 + $0x20] sm:$0xff] }
 0x3df   :  { %v3124_v50 = vpop.eup %3123  ;;  %v657_v60 = vpop.permute.xlu1 %656 }
 0x3e0   :  { %v659_v61 = vsel %vm107_vm2, %v3124_v50, %v657_v60  ;;  %821 = vrot.lane.b32.xlu0 %v3124_v50, %s3193_s13  ;;  %v3977_v50 = vld [vmem:[%s4535_s4 + $0x68] sm:$0xff]  ;;  %v3984_v60 = vld [vmem:[%s4535_s4 + $0x60] sm:$0xff] }
 0x3e1   :  { %2643 = vmatmul.mubr.f32.vlgmr.msra.gmra.mxu1 %v659_v61  ;;  %v3991_v61 = vld [vmem:[%s4535_s4 + $0x58] sm:$0xff] }
 0x3e2   :  { %2665 = vmatpush3.msra.mxu1 %v3246_v3  ;;  %2696 = vmatprep.mubr.msk.f32.mxu1 %vm3192_vm0, %v3191_v2 }
 0x3e3   :  { %2666 = vmatprep.subr.mxu1 %v3191_v2 }
 0x3e4   :  { %1051 = vperm.xlu0 %3113, %v2033_v62   ;;  %2667 = vmatpush3.msra.mxu1 %v3252_v4  ;;  %v3998_v62 = vld [vmem:[%s4535_s4 + $0x50] sm:$0xff] }
 0x3e5   :  { %2668 = vmatprep.subr.mxu1 %v3191_v2 }
 0x3e6   :  { %2669 = vmatpush3.msra.mxu1 %v3261_v6 }
 0x3e7   :  { %2670 = vmatprep.subr.mxu1 %v3191_v2 }
 0x3e8   :  { %2671 = vmatpush3.msra.mxu1 %v3271_v7 }
 0x3e9   :  { %2672 = vmatprep.subr.mxu1 %v3191_v2 }
 0x3ea   :  { %2673 = vmatpush3.msra.mxu1 %v3278_v8 }
 0x3eb   :  { %2674 = vmatprep.subr.mxu1 %v3191_v2 }
 0x3ec   :  { %2675 = vmatpush3.msra.mxu1 %v3298_v11  ;;  %v815_v20 = vpop.permute.xlu1 %814 }
 0x3ed   :  { %2676 = vmatprep.subr.mxu1 %v3191_v2  ;;  %v816_v30 = vsel %vm92_vm1, %v812_v28, %v815_v20  ;;  %v4073_v20 = vld [vmem:[%s4534_s2 + $0x50] sm:$0xff]  ;;  %v4080_v28 = vld [vmem:[%s4534_s2 + $0x48] sm:$0xff] }
 0x3ee   :  { %2677 = vmatpush3.msra.mxu1 %v3312_v13  ;;  %vm817_vm6 = vcmp.eq.s32.totalorder %v816_v30, %v3422_v32  ;;  %v4087_v30 = vld [vmem:[%s4534_s2 + $0x40] sm:$0xff] }
 0x3ef   :  { %2678 = vmatprep.subr.mxu1 %v3191_v2  ;;  %v2030_v31 = vsel %vm817_vm6, 1.0, %v3191_v2 }
 0x3f0   :  { %2679 = vmatpush3.msra.mxu1 %v3326_v15 }
 0x3f1   :  { %2680 = vmatprep.subr.mxu1 %v3191_v2 }
 0x3f2   :  { %2681 = vmatpush3.msra.mxu1 %v3340_v17 }
 0x3f3   :  { %2682 = vmatprep.subr.mxu1 %v3191_v2 }
 0x3f4   :  { %2683 = vmatpush3.msra.mxu1 %v3354_v19 }
 0x3f5   :  { %2684 = vmatprep.subr.mxu1 %v3191_v2 }
 0x3f6   :  { %2685 = vmatpush3.msra.mxu1 %v3371_v22 }
 0x3f7   :  { %2686 = vmatprep.subr.mxu1 %v3191_v2 }
 0x3f8   :  { %2687 = vmatpush3.msra.mxu1 %v3379_v23 }
 0x3f9   :  { %2688 = vmatprep.subr.mxu1 %v3191_v2 }
 0x3fa   :  { %2689 = vmatpush3.msra.mxu1 %v3388_v24 }
 0x3fb   :  { %2690 = vmatprep.subr.mxu1 %v3191_v2 }
 0x3fc   :  { %2691 = vmatpush3.msra.mxu1 %v3395_v25 }
 0x3fd   :  { %2692 = vmatprep.subr.mxu1 %v3191_v2 }
 0x3fe   :  { %2693 = vmatpush3.msra.mxu1 %v3402_v26 }
 0x3ff   :  { %2694 = vmatprep.subr.mxu1 %v3191_v2 }
 0x400   :  { %2695 = vmatpush3.msra.mxu1 %v3409_v27 }
 0x401   :  { %2734 = vmatprep.subr.mxu1 %v3191_v2 }
 0x42d   :  { %v560_v63 = vpop.f32.mrf.mxu1 }
 0x42e   :  { %v561_v0 = vadd.f32 %v3709_v51, %v560_v63  ;;  %v4005_v63 = vld [vmem:[%s4535_s4 + $0x48] sm:$0xff] }
 0x42f   :  { %v2574_v1 = vpop.f32.mrf.mxu1 }
 0x430   :  { %2022 = vst [vmem:[%s4540_s8 + $0x8] sm:$0xff] %v561_v0  ;;  %v4059_v0 = vld [vmem:[%s4534_s2 + $0x60] sm:$0xff]  ;;  %v4066_v1 = vld [vmem:[%s4534_s2 + $0x58] sm:$0xff] }
 0x452   :  { %v822_v33 = vpop.permute.xlu0 %821 }
 0x453   :  { %v824_v34 = vsel %vm107_vm2, %v2030_v31, %v822_v33  ;;  %v4094_v31 = vld [vmem:[%s4534_s2 + $0x38] sm:$0xff]  ;;  %v4101_v33 = vld [vmem:[%s4534_s2 + $0x30] sm:$0xff] }
 0x454   :  { %2697 = vmatmul.mubr.f32.vlgmr.msra.gmra.mxu1 %v824_v34  ;;  %v4108_v34 = vld [vmem:[%s4534_s2 + $0x28] sm:$0xff] }
 0x455   :  { %2735 = vmatpush3.msra.mxu1 %v3545_v52  ;;  %2750 = vmatprep.mubr.msk.f32.mxu1 %vm3192_vm0, %v3191_v2 }
 0x456   :  { %2736 = vmatprep.subr.mxu1 %v3191_v2 }
 0x457   :  { %2737 = vmatpush3.msra.mxu1 %v3552_v53 }
 0x458   :  { %2738 = vmatprep.subr.mxu1 %v3191_v2 }
 0x459   :  { %2739 = vmatpush3.msra.mxu1 %v3557_v54 }
 0x45a   :  { %2740 = vmatprep.subr.mxu1 %v3191_v2 }
 0x45b   :  { %2741 = vmatpush3.msra.mxu1 %v3564_v55 }
 0x45c   :  { %2742 = vmatprep.subr.mxu1 %v3191_v2 }
 0x45d   :  { %2743 = vmatpush3.msra.mxu1 %v3571_v56 }
 0x45e   :  { %2744 = vmatprep.subr.mxu1 %v3191_v2 }
 0x45f   :  { %2745 = vmatpush3.msra.mxu1 %v3578_v57 }
 0x460   :  { %2746 = vmatprep.subr.mxu1 %v3191_v2 }
 0x461   :  { %2747 = vmatpush3.msra.mxu1 %v3585_v58 }
 0x462   :  { %2748 = vmatprep.subr.mxu1 %v3191_v2 }
 0x463   :  { %2749 = vmatpush3.msra.mxu1 %v3592_v59 }
 0x464   :  { %2788 = vmatprep.subr.mxu1 %v3191_v2 }
 0x4a1   :  { %v726_v35 = vpop.f32.mrf.mxu1 }
 0x4a2   :  { %v727_v37 = vadd.f32 %v3624_v5, %v726_v35  ;;  %v4115_v35 = vld [vmem:[%s4534_s2 + $0x20] sm:$0xff] }
 0x4a3   :  { %v2644_v47 = vpop.f32.mrf.mxu1 }
 0x4a4   :  { %3125 = vtanh.f32 %v727_v37  ;;  %v4122_v37 = vld [vmem:[%s4534_s2 + $0x18] sm:$0xff]  ;;  %v4129_v47 = vld [vmem:[%s4534_s2 + $0x10] sm:$0xff] }
 0x4b1   :  { %v3126_v48 = vpop.eup %3125 }
 0x4b2   :  { %896 = vrot.lane.b32.xlu1 %v3126_v48, %s3193_s13  ;;  %2662 = vmatmul.mubr.msk.f32.vlgmr.msra.gmra.mxu0 %vm107_vm2, %v3126_v48  ;;  %v4136_v48 = vld [vmem:[%s4534_s2 + $0x8] sm:$0xff] }
 0x4b3   :  { %2700 = vmatpush3.msra.mxu0 %v3283_v9  ;;  %2731 = vmatprep.mubr.msk.f32.mxu0 %vm3192_vm0, %v3191_v2 }
 0x4b4   :  { %2701 = vmatprep.subr.mxu0 %v3191_v2 }
 0x4b5   :  { %2702 = vmatpush3.msra.mxu0 %v3288_v10 }
 0x4b6   :  { %1054 = vperm.xlu1 %3114, %v2034_v49   ;;  %2703 = vmatprep.subr.mxu0 %v3191_v2  ;;  %v4143_v49 = vld [vmem:[%s4534_s2] sm:$0xff] }
 0x4b7   :  { %2704 = vmatpush3.msra.mxu0 %v3304_v12 }
 0x4b8   :  { %2705 = vmatprep.subr.mxu0 %v3191_v2 }
 0x4b9   :  { %2706 = vmatpush3.msra.mxu0 %v3318_v14 }
 0x4ba   :  { %2707 = vmatprep.subr.mxu0 %v3191_v2 }
 0x4bb   :  { %2708 = vmatpush3.msra.mxu0 %v3332_v16 }
 0x4bc   :  { %2709 = vmatprep.subr.mxu0 %v3191_v2 }
 0x4bd   :  { %2710 = vmatpush3.msra.mxu0 %v3346_v18 }
 0x4be   :  { %2711 = vmatprep.subr.mxu0 %v3191_v2 }
 0x4bf   :  { %2712 = vmatpush3.msra.mxu0 %v3365_v21  ;;  %v2038_v21 = vld [vmem:[%s4532_s0 + $0x28] sm:$0xff] }
 0x4c0   :  { %2713 = vmatprep.subr.mxu0 %v3191_v2 }
 0x4c1   :  { %2714 = vmatpush3.msra.mxu0 %v3434_v36 }
 0x4c2   :  { %2715 = vmatprep.subr.mxu0 %v3191_v2 }
 0x4c3   :  { %2716 = vmatpush3.msra.mxu0 %v3444_v38 }
 0x4c4   :  { %2717 = vmatprep.subr.mxu0 %v3191_v2 }
 0x4c5   :  { %2718 = vmatpush3.msra.mxu0 %v3451_v39 }
 0x4c6   :  { %2719 = vmatprep.subr.mxu0 %v3191_v2 }
 0x4c7   :  { %2720 = vmatpush3.msra.mxu0 %v3456_v40 }
 0x4c8   :  { %2721 = vmatprep.subr.mxu0 %v3191_v2 }
 0x4c9   :  { %2722 = vmatpush3.msra.mxu0 %v3463_v41 }
 0x4ca   :  { %2723 = vmatprep.subr.mxu0 %v3191_v2 }
 0x4cb   :  { %2724 = vmatpush3.msra.mxu0 %v3470_v42 }
 0x4cc   :  { %2725 = vmatprep.subr.mxu0 %v3191_v2 }
 0x4cd   :  { %2726 = vmatpush3.msra.mxu0 %v3477_v43 }
 0x4ce   :  { %2727 = vmatprep.subr.mxu0 %v3191_v2 }
 0x4cf   :  { %2728 = vmatpush3.msra.mxu0 %v3484_v44 }
 0x4d0   :  { %2729 = vmatprep.subr.mxu0 %v3191_v2 }
 0x4d1   :  { %2730 = vmatpush3.msra.mxu0 %v3491_v45 }
 0x4d2   :  { %2753 = vmatprep.subr.mxu0 %v3191_v2 }
 0x514   :  { %v891_v9 = vpop.f32.mrf.mxu1 }
 0x515   :  { %v892_v10 = vadd.f32 %v3500_v46, %v891_v9 }
 0x516   :  { %v2698_v12 = vpop.f32.mrf.mxu1 }
 0x517   :  { %3127 = vtanh.f32 %v892_v10 }
 0x524   :  { %v3128_v14 = vpop.eup %3127  ;;  %v897_v16 = vpop.permute.xlu1 %896 }
 0x525   :  { %v899_v18 = vsel %vm107_vm2, %v3128_v14, %v897_v16  ;;  %1061 = vrot.lane.b32.xlu0 %v3128_v14, %s3193_s13 }
 0x526   :  { %2732 = vmatmul.mubr.f32.vlgmr.msra.gmra.mxu0 %v899_v18 }
 0x527   :  { %2754 = vmatpush3.msra.mxu0 %v3246_v3  ;;  %2785 = vmatprep.mubr.msk.f32.mxu0 %vm3192_vm0, %v3191_v2 }
 0x528   :  { %2755 = vmatprep.subr.mxu0 %v3191_v2 }
 0x529   :  { %1291 = vperm.xlu0 %3113, %v2038_v21   ;;  %2756 = vmatpush3.msra.mxu0 %v3252_v4 }
 0x52a   :  { %2757 = vmatprep.subr.mxu0 %v3191_v2 }
 0x52b   :  { %2758 = vmatpush3.msra.mxu0 %v3261_v6 }
 0x52c   :  { %2759 = vmatprep.subr.mxu0 %v3191_v2 }
 0x52d   :  { %2760 = vmatpush3.msra.mxu0 %v3271_v7 }
 0x52e   :  { %2761 = vmatprep.subr.mxu0 %v3191_v2 }
 0x52f   :  { %2762 = vmatpush3.msra.mxu0 %v3278_v8  ;;  %v1052_v8 = vpop.permute.xlu0 %1051 }
 0x530   :  { %2763 = vmatprep.subr.mxu0 %v3191_v2 }
 0x531   :  { %2764 = vmatpush3.msra.mxu0 %v3298_v11  ;;  %v1055_v7 = vpop.permute.xlu1 %1054 }
 0x532   :  { %2765 = vmatprep.subr.mxu0 %v3191_v2  ;;  %v1056_v11 = vsel %vm92_vm1, %v1052_v8, %v1055_v7  ;;  %v4234_v7 = vld [vmem:[%s4535_s4 + $0x18] sm:$0xff]  ;;  %v4241_v8 = vld [vmem:[%s4535_s4 + $0x10] sm:$0xff] }
 0x533   :  { %2766 = vmatpush3.msra.mxu0 %v3312_v13  ;;  %vm1057_vm7 = vcmp.eq.s32.totalorder %v1056_v11, %v3422_v32  ;;  %v4248_v11 = vld [vmem:[%s4535_s4 + $0x8] sm:$0xff] }
 0x534   :  { %2767 = vmatprep.subr.mxu0 %v3191_v2  ;;  %v2035_v13 = vsel %vm1057_vm7, 1.0, %v3191_v2 }
 0x535   :  { %2768 = vmatpush3.msra.mxu0 %v3326_v15 }
 0x536   :  { %2769 = vmatprep.subr.mxu0 %v3191_v2 }
 0x537   :  { %2770 = vmatpush3.msra.mxu0 %v3340_v17 }
 0x538   :  { %2771 = vmatprep.subr.mxu0 %v3191_v2 }
 0x539   :  { %2772 = vmatpush3.msra.mxu0 %v3354_v19 }
 0x53a   :  { %2773 = vmatprep.subr.mxu0 %v3191_v2 }
 0x53b   :  { %2774 = vmatpush3.msra.mxu0 %v3371_v22 }
 0x53c   :  { %2775 = vmatprep.subr.mxu0 %v3191_v2 }
 0x53d   :  { %2776 = vmatpush3.msra.mxu0 %v3379_v23 }
 0x53e   :  { %2777 = vmatprep.subr.mxu0 %v3191_v2 }
 0x53f   :  { %2778 = vmatpush3.msra.mxu0 %v3388_v24 }
 0x540   :  { %2779 = vmatprep.subr.mxu0 %v3191_v2 }
 0x541   :  { %2780 = vmatpush3.msra.mxu0 %v3395_v25  ;;  %v2039_v25 = vld [vmem:[%s4533_s1 + $0x28] sm:$0xff] }
 0x542   :  { %2781 = vmatprep.subr.mxu0 %v3191_v2 }
 0x543   :  { %2782 = vmatpush3.msra.mxu0 %v3402_v26  ;;  %v3961_v26 = vld [vmem:[%s4535_s4 + $0x78] sm:$0xff] }
 0x544   :  { %2783 = vmatprep.subr.mxu0 %v3191_v2 }
 0x545   :  { %2784 = vmatpush3.msra.mxu0 %v3409_v27  ;;  %v3970_v27 = vld [vmem:[%s4535_s4 + $0x70] sm:$0xff] }
 0x546   :  { %2823 = vmatprep.subr.mxu0 %v3191_v2 }
 0x572   :  { %v800_v3 = vpop.f32.mrf.mxu0 }
 0x573   :  { %v801_v4 = vadd.f32 %v3709_v51, %v800_v3 }
 0x574   :  { %v2663_v6 = vpop.f32.mrf.mxu0 }
 0x575   :  { %2027 = vst [vmem:[%s4540_s8 + $0x10] sm:$0xff] %v801_v4  ;;  %v4227_v6 = vld [vmem:[%s4535_s4 + $0x20] sm:$0xff] }
 0x597   :  { %v1062_v15 = vpop.permute.xlu0 %1061 }
 0x598   :  { %v1064_v17 = vsel %vm107_vm2, %v2035_v13, %v1062_v15  ;;  %v4255_v13 = vld [vmem:[%s4535_s4] sm:$0xff] }
 0x599   :  { %2786 = vmatmul.mubr.f32.vlgmr.msra.gmra.mxu0 %v1064_v17  ;;  %v4262_v17 = vld [vmem:[%s4536_s3] ss:$0 sm:$0xff] }
 0x59a   :  { %2824 = vmatpush3.msra.mxu0 %v3545_v52  ;;  %2839 = vmatprep.mubr.msk.f32.mxu0 %vm3192_vm0, %v3191_v2 }
 0x59b   :  { %2825 = vmatprep.subr.mxu0 %v3191_v2 }
 0x59c   :  { %2826 = vmatpush3.msra.mxu0 %v3552_v53 }
 0x59d   :  { %2827 = vmatprep.subr.mxu0 %v3191_v2 }
 0x59e   :  { %2828 = vmatpush3.msra.mxu0 %v3557_v54 }
 0x59f   :  { %2829 = vmatprep.subr.mxu0 %v3191_v2 }
 0x5a0   :  { %2830 = vmatpush3.msra.mxu0 %v3564_v55 }
 0x5a1   :  { %2831 = vmatprep.subr.mxu0 %v3191_v2 }
 0x5a2   :  { %2832 = vmatpush3.msra.mxu0 %v3571_v56 }
 0x5a3   :  { %2833 = vmatprep.subr.mxu0 %v3191_v2 }
 0x5a4   :  { %2834 = vmatpush3.msra.mxu0 %v3578_v57  ;;  %v1292_v16 = vpop.permute.xlu0 %1291 }
 0x5a5   :  { %2835 = vmatprep.subr.mxu0 %v3191_v2 }
 0x5a6   :  { %2836 = vmatpush3.msra.mxu0 %v3585_v58 }
 0x5a7   :  { %2837 = vmatprep.subr.mxu0 %v3191_v2 }
 0x5a8   :  { %2838 = vmatpush3.msra.mxu0 %v3592_v59 }
 0x5a9   :  { %2877 = vmatprep.subr.mxu0 %v3191_v2 }
 0x5e6   :  { %v966_v19 = vpop.f32.mrf.mxu0 }
 0x5e7   :  { %v967_v22 = vadd.f32 %v3624_v5, %v966_v19 }
 0x5e8   :  { %v2733_v23 = vpop.f32.mrf.mxu0 }
 0x5e9   :  { %3129 = vtanh.f32 %v967_v22 }
 0x5f6   :  { %v3130_v24 = vpop.eup %3129 }
 0x5f7   :  { %1136 = vrot.lane.b32.xlu1 %v3130_v24, %s3193_s13  ;;  %2751 = vmatmul.mubr.msk.f32.vlgmr.msra.gmra.mxu1 %vm107_vm2, %v3130_v24 }
 0x5f8   :  { %2789 = vmatpush3.msra.mxu1 %v3961_v26  ;;  %2820 = vmatprep.mubr.msk.f32.mxu1 %vm3192_vm0, %v3191_v2 }
 0x5f9   :  { %2790 = vmatprep.subr.mxu1 %v3191_v2 }
 0x5fa   :  { %2791 = vmatpush3.msra.mxu1 %v3970_v27 }
 0x5fb   :  { %1294 = vperm.xlu1 %3114, %v2039_v25   ;;  %2792 = vmatprep.subr.mxu1 %v3191_v2 }
 0x5fc   :  { %2793 = vmatpush3.msra.mxu1 %v3977_v50 }
 0x5fd   :  { %2794 = vmatprep.subr.mxu1 %v3191_v2 }
 0x5fe   :  { %2795 = vmatpush3.msra.mxu1 %v3984_v60 }
 0x5ff   :  { %2796 = vmatprep.subr.mxu1 %v3191_v2 }
 0x600   :  { %2797 = vmatpush3.msra.mxu1 %v3991_v61 }
 0x601   :  { %2798 = vmatprep.subr.mxu1 %v3191_v2 }
 0x602   :  { %2799 = vmatpush3.msra.mxu1 %v3998_v62 }
 0x603   :  { %2800 = vmatprep.subr.mxu1 %v3191_v2 }
 0x604   :  { %2801 = vmatpush3.msra.mxu1 %v4005_v63 }
 0x605   :  { %2802 = vmatprep.subr.mxu1 %v3191_v2 }
 0x606   :  { %2803 = vmatpush3.msra.mxu1 %v3434_v36 }
 0x607   :  { %2804 = vmatprep.subr.mxu1 %v3191_v2 }
 0x608   :  { %2805 = vmatpush3.msra.mxu1 %v3444_v38 }
 0x609   :  { %2806 = vmatprep.subr.mxu1 %v3191_v2 }
 0x60a   :  { %2807 = vmatpush3.msra.mxu1 %v3451_v39 }
 0x60b   :  { %2808 = vmatprep.subr.mxu1 %v3191_v2 }
 0x60c   :  { %2809 = vmatpush3.msra.mxu1 %v3456_v40 }
 0x60d   :  { %2810 = vmatprep.subr.mxu1 %v3191_v2 }
 0x60e   :  { %2811 = vmatpush3.msra.mxu1 %v3463_v41 }
 0x60f   :  { %2812 = vmatprep.subr.mxu1 %v3191_v2 }
 0x610   :  { %2813 = vmatpush3.msra.mxu1 %v3470_v42 }
 0x611   :  { %2814 = vmatprep.subr.mxu1 %v3191_v2 }
 0x612   :  { %2815 = vmatpush3.msra.mxu1 %v3477_v43  ;;  %v2043_v43 = vld [vmem:[%s4532_s0 + $0x30] sm:$0xff] }
 0x613   :  { %2816 = vmatprep.subr.mxu1 %v3191_v2 }
 0x614   :  { %2817 = vmatpush3.msra.mxu1 %v3484_v44  ;;  %v4036_v44 = vld [vmem:[%s4534_s2 + $0x78] sm:$0xff] }
 0x615   :  { %2818 = vmatprep.subr.mxu1 %v3191_v2 }
 0x616   :  { %2819 = vmatpush3.msra.mxu1 %v3491_v45  ;;  %v4045_v45 = vld [vmem:[%s4534_s2 + $0x70] sm:$0xff] }
 0x617   :  { %2842 = vmatprep.subr.mxu1 %v3191_v2 }
 0x659   :  { %v1131_v36 = vpop.f32.mrf.mxu0 }
 0x65a   :  { %v1132_v38 = vadd.f32 %v3500_v46, %v1131_v36  ;;  %v4052_v46 = vld [vmem:[%s4534_s2 + $0x68] sm:$0xff]  ;;  %v2048_v36 = vld [vmem:[%s4532_s0 + $0x38] sm:$0xff] }
 0x65b   :  { %v2787_v39 = vpop.f32.mrf.mxu0 }
 0x65c   :  { %3131 = vtanh.f32 %v1132_v38 }
 0x669   :  { %v3132_v40 = vpop.eup %3131  ;;  %v1137_v41 = vpop.permute.xlu1 %1136 }
 0x66a   :  { %v1139_v42 = vsel %vm107_vm2, %v3132_v40, %v1137_v41  ;;  %1301 = vrot.lane.b32.xlu0 %v3132_v40, %s3193_s13 }
 0x66b   :  { %2821 = vmatmul.mubr.f32.vlgmr.msra.gmra.mxu1 %v1139_v42 }
 0x66c   :  { %2843 = vmatpush3.msra.mxu1 %v4036_v44  ;;  %2874 = vmatprep.mubr.msk.f32.mxu1 %vm3192_vm0, %v3191_v2 }
 0x66d   :  { %2844 = vmatprep.subr.mxu1 %v3191_v2 }
 0x66e   :  { %1531 = vperm.xlu0 %3113, %v2043_v43   ;;  %2845 = vmatpush3.msra.mxu1 %v4045_v45 }
 0x66f   :  { %2846 = vmatprep.subr.mxu1 %v3191_v2 }
 0x670   :  { %2847 = vmatpush3.msra.mxu1 %v4052_v46 }
 0x671   :  { %2848 = vmatprep.subr.mxu1 %v3191_v2 }
 0x672   :  { %2849 = vmatpush3.msra.mxu1 %v4059_v0 }
 0x673   :  { %2850 = vmatprep.subr.mxu1 %v3191_v2 }
 0x674   :  { %2851 = vmatpush3.msra.mxu1 %v4066_v1 }
 0x675   :  { %2852 = vmatprep.subr.mxu1 %v3191_v2 }
 0x676   :  { %2853 = vmatpush3.msra.mxu1 %v4073_v20  ;;  %v1295_v14 = vpop.permute.xlu1 %1294 }
 0x677   :  { %2854 = vmatprep.subr.mxu1 %v3191_v2  ;;  %v1296_v18 = vsel %vm92_vm1, %v1292_v16, %v1295_v14  ;;  %v4325_v14 = vld [vmem:[%s4537_s6 + $0x30] sm:$0xff]  ;;  %v4332_v16 = vld [vmem:[%s4537_s6 + $0x28] sm:$0xff] }
 0x678   :  { %2855 = vmatpush3.msra.mxu1 %v4080_v28  ;;  %vm1297_vm8 = vcmp.eq.s32.totalorder %v1296_v18, %v3422_v32  ;;  %v4339_v18 = vld [vmem:[%s4537_s6 + $0x20] sm:$0xff] }
 0x679   :  { %2856 = vmatprep.subr.mxu1 %v3191_v2  ;;  %v2040_v21 = vsel %vm1297_vm8, 1.0, %v3191_v2 }
 0x67a   :  { %2857 = vmatpush3.msra.mxu1 %v4087_v30 }
 0x67b   :  { %2858 = vmatprep.subr.mxu1 %v3191_v2 }
 0x67c   :  { %2859 = vmatpush3.msra.mxu1 %v4094_v31 }
 0x67d   :  { %2860 = vmatprep.subr.mxu1 %v3191_v2 }
 0x67e   :  { %2861 = vmatpush3.msra.mxu1 %v4101_v33 }
 0x67f   :  { %2862 = vmatprep.subr.mxu1 %v3191_v2 }
 0x680   :  { %2863 = vmatpush3.msra.mxu1 %v4108_v34 }
 0x681   :  { %2864 = vmatprep.subr.mxu1 %v3191_v2 }
 0x682   :  { %2865 = vmatpush3.msra.mxu1 %v4115_v35 }
 0x683   :  { %2866 = vmatprep.subr.mxu1 %v3191_v2 }
 0x684   :  { %2867 = vmatpush3.msra.mxu1 %v4122_v37 }
 0x685   :  { %2868 = vmatprep.subr.mxu1 %v3191_v2 }
 0x686   :  { %2869 = vmatpush3.msra.mxu1 %v4129_v47 }
 0x687   :  { %2870 = vmatprep.subr.mxu1 %v3191_v2 }
 0x688   :  { %2871 = vmatpush3.msra.mxu1 %v4136_v48 }
 0x689   :  { %2872 = vmatprep.subr.mxu1 %v3191_v2 }
 0x68a   :  { %2873 = vmatpush3.msra.mxu1 %v4143_v49 }
 0x68b   :  { %2912 = vmatprep.subr.mxu1 %v3191_v2 }
 0x6b7   :  { %v1040_v9 = vpop.f32.mrf.mxu1 }
 0x6b8   :  { %v1041_v10 = vadd.f32 %v3709_v51, %v1040_v9 }
 0x6b9   :  { %v2752_v12 = vpop.f32.mrf.mxu1 }
 0x6ba   :  { %2032 = vst [vmem:[%s4540_s8 + $0x18] sm:$0xff] %v1041_v10 }
 0x6dc   :  { %v1302_v3 = vpop.permute.xlu0 %1301 }
 0x6dd   :  { %v1304_v4 = vsel %vm107_vm2, %v2040_v21, %v1302_v3  ;;  %v4346_v21 = vld [vmem:[%s4537_s6 + $0x18] sm:$0xff]  ;;  %v4353_v3 = vld [vmem:[%s4537_s6 + $0x10] sm:$0xff] }
 0x6de   :  { %2875 = vmatmul.mubr.f32.vlgmr.msra.gmra.mxu1 %v1304_v4  ;;  %v4360_v4 = vld [vmem:[%s4537_s6 + $0x8] sm:$0xff] }
 0x6df   :  { %2913 = vmatpush3.msra.mxu1 %v3545_v52  ;;  %2928 = vmatprep.mubr.msk.f32.mxu1 %vm3192_vm0, %v3191_v2 }
 0x6e0   :  { %2914 = vmatprep.subr.mxu1 %v3191_v2 }
 0x6e1   :  { %2915 = vmatpush3.msra.mxu1 %v3552_v53 }
 0x6e2   :  { %2916 = vmatprep.subr.mxu1 %v3191_v2 }
 0x6e3   :  { %2917 = vmatpush3.msra.mxu1 %v3557_v54 }
 0x6e4   :  { %2918 = vmatprep.subr.mxu1 %v3191_v2 }
 0x6e5   :  { %2919 = vmatpush3.msra.mxu1 %v3564_v55 }
 0x6e6   :  { %2920 = vmatprep.subr.mxu1 %v3191_v2 }
 0x6e7   :  { %2921 = vmatpush3.msra.mxu1 %v3571_v56  ;;  %v2044_v56 = vld [vmem:[%s4533_s1 + $0x30] sm:$0xff] }
 0x6e8   :  { %2922 = vmatprep.subr.mxu1 %v3191_v2 }
 0x6e9   :  { %2923 = vmatpush3.msra.mxu1 %v3578_v57  ;;  %v4199_v57 = vld [vmem:[%s4535_s4 + $0x40] sm:$0xff]  ;;  %v1532_v42 = vpop.permute.xlu0 %1531 }
 0x6ea   :  { %2924 = vmatprep.subr.mxu1 %v3191_v2 }
 0x6eb   :  { %2925 = vmatpush3.msra.mxu1 %v3585_v58  ;;  %v4206_v58 = vld [vmem:[%s4535_s4 + $0x38] sm:$0xff] }
 0x6ec   :  { %2926 = vmatprep.subr.mxu1 %v3191_v2 }
 0x6ed   :  { %2927 = vmatpush3.msra.mxu1 %v3592_v59  ;;  %v4213_v59 = vld [vmem:[%s4535_s4 + $0x30] sm:$0xff] }
 0x6ee   :  { %2966 = vmatprep.subr.mxu1 %v3191_v2 }
 0x72b   :  { %v1206_v52 = vpop.f32.mrf.mxu1 }
 0x72c   :  { %v1207_v53 = vadd.f32 %v3624_v5, %v1206_v52  ;;  %v4220_v5 = vld [vmem:[%s4535_s4 + $0x28] sm:$0xff]  ;;  %v4367_v52 = vld [vmem:[%s4537_s6] sm:$0xff] }
 0x72d   :  { %v2822_v54 = vpop.f32.mrf.mxu1 }
 0x72e   :  { %3133 = vtanh.f32 %v1207_v53  ;;  %v4374_v54 = vld [vmem:[%s4538_s5] ss:$0 sm:$0xff] }
 0x73b   :  { %v3134_v55 = vpop.eup %3133 }
 0x73c   :  { %1376 = vrot.lane.b32.xlu1 %v3134_v55, %s3193_s13  ;;  %2840 = vmatmul.mubr.msk.f32.vlgmr.msra.gmra.mxu0 %vm107_vm2, %v3134_v55 }
 0x73d   :  { %2878 = vmatpush3.msra.mxu0 %v3961_v26  ;;  %2909 = vmatprep.mubr.msk.f32.mxu0 %vm3192_vm0, %v3191_v2 }
 0x73e   :  { %2879 = vmatprep.subr.mxu0 %v3191_v2 }
 0x73f   :  { %2880 = vmatpush3.msra.mxu0 %v3970_v27 }
 0x740   :  { %1534 = vperm.xlu1 %3114, %v2044_v56   ;;  %2881 = vmatprep.subr.mxu0 %v3191_v2 }
 0x741   :  { %2882 = vmatpush3.msra.mxu0 %v3977_v50 }
 0x742   :  { %2883 = vmatprep.subr.mxu0 %v3191_v2 }
 0x743   :  { %2884 = vmatpush3.msra.mxu0 %v3984_v60 }
 0x744   :  { %2885 = vmatprep.subr.mxu0 %v3191_v2 }
 0x745   :  { %2886 = vmatpush3.msra.mxu0 %v3991_v61 }
 0x746   :  { %2887 = vmatprep.subr.mxu0 %v3191_v2 }
 0x747   :  { %2888 = vmatpush3.msra.mxu0 %v3998_v62 }
 0x748   :  { %2889 = vmatprep.subr.mxu0 %v3191_v2 }
 0x749   :  { %2890 = vmatpush3.msra.mxu0 %v4005_v63 }
 0x74a   :  { %2891 = vmatprep.subr.mxu0 %v3191_v2 }
 0x74b   :  { %2892 = vmatpush3.msra.mxu0 %v4199_v57 }
 0x74c   :  { %2893 = vmatprep.subr.mxu0 %v3191_v2 }
 0x74d   :  { %2894 = vmatpush3.msra.mxu0 %v4206_v58 }
 0x74e   :  { %2895 = vmatprep.subr.mxu0 %v3191_v2 }
 0x74f   :  { %2896 = vmatpush3.msra.mxu0 %v4213_v59 }
 0x750   :  { %2897 = vmatprep.subr.mxu0 %v3191_v2 }
 0x751   :  { %2898 = vmatpush3.msra.mxu0 %v4220_v5 }
 0x752   :  { %2899 = vmatprep.subr.mxu0 %v3191_v2 }
 0x753   :  { %2900 = vmatpush3.msra.mxu0 %v4227_v6 }
 0x754   :  { %2901 = vmatprep.subr.mxu0 %v3191_v2 }
 0x755   :  { %2902 = vmatpush3.msra.mxu0 %v4234_v7 }
 0x756   :  { %2903 = vmatprep.subr.mxu0 %v3191_v2 }
 0x757   :  { %2904 = vmatpush3.msra.mxu0 %v4241_v8 }
 0x758   :  { %2905 = vmatprep.subr.mxu0 %v3191_v2 }
 0x759   :  { %2906 = vmatpush3.msra.mxu0 %v4248_v11 }
 0x75a   :  { %2907 = vmatprep.subr.mxu0 %v3191_v2 }
 0x75b   :  { %2908 = vmatpush3.msra.mxu0 %v4255_v13 }
 0x75c   :  { %2931 = vmatprep.subr.mxu0 %v3191_v2 }
 0x79e   :  { %v1371_v15 = vpop.f32.mrf.mxu1 }
 0x79f   :  { %v1372_v19 = vadd.f32 %v4262_v17, %v1371_v15 }
 0x7a0   :  { %v2876_v22 = vpop.f32.mrf.mxu1 }
 0x7a1   :  { %3135 = vtanh.f32 %v1372_v19  ;;  %v2049_v19 = vld [vmem:[%s4533_s1 + $0x38] sm:$0xff] }
 0x7ae   :  { %v3136_v23 = vpop.eup %3135  ;;  %v1377_v24 = vpop.permute.xlu1 %1376 }
 0x7af   :  { %v1379_v25 = vsel %vm107_vm2, %v3136_v23, %v1377_v24  ;;  %1541 = vrot.lane.b32.xlu0 %v3136_v23, %s3193_s13 }
 0x7b0   :  { %2910 = vmatmul.mubr.f32.vlgmr.msra.gmra.mxu0 %v1379_v25 }
 0x7b1   :  { %2932 = vmatpush3.msra.mxu0 %v4036_v44  ;;  %2963 = vmatprep.mubr.msk.f32.mxu0 %vm3192_vm0, %v3191_v2 }
 0x7b2   :  { %2933 = vmatprep.subr.mxu0 %v3191_v2 }
 0x7b3   :  { %1771 = vperm.xlu0 %3113, %v2048_v36   ;;  %2934 = vmatpush3.msra.mxu0 %v4045_v45 }
 0x7b4   :  { %2935 = vmatprep.subr.mxu0 %v3191_v2 }
 0x7b5   :  { %2936 = vmatpush3.msra.mxu0 %v4052_v46 }
 0x7b6   :  { %2937 = vmatprep.subr.mxu0 %v3191_v2 }
 0x7b7   :  { %2938 = vmatpush3.msra.mxu0 %v4059_v0 }
 0x7b8   :  { %2939 = vmatprep.subr.mxu0 %v3191_v2 }
 0x7b9   :  { %2940 = vmatpush3.msra.mxu0 %v4066_v1 }
 0x7ba   :  { %2941 = vmatprep.subr.mxu0 %v3191_v2 }
 0x7bb   :  { %2942 = vmatpush3.msra.mxu0 %v4073_v20  ;;  %v1535_v41 = vpop.permute.xlu1 %1534 }
 0x7bc   :  { %2943 = vmatprep.subr.mxu0 %v3191_v2  ;;  %v1536_v43 = vsel %vm92_vm1, %v1532_v42, %v1535_v41 }
 0x7bd   :  { %2944 = vmatpush3.msra.mxu0 %v4080_v28  ;;  %vm1537_vm9 = vcmp.eq.s32.totalorder %v1536_v43, %v3422_v32 }
 0x7be   :  { %2945 = vmatprep.subr.mxu0 %v3191_v2  ;;  %v2045_v9 = vsel %vm1537_vm9, 1.0, %v3191_v2 }
 0x7bf   :  { %2946 = vmatpush3.msra.mxu0 %v4087_v30 }
 0x7c0   :  { %2947 = vmatprep.subr.mxu0 %v3191_v2 }
 0x7c1   :  { %2948 = vmatpush3.msra.mxu0 %v4094_v31 }
 0x7c2   :  { %2949 = vmatprep.subr.mxu0 %v3191_v2 }
 0x7c3   :  { %2950 = vmatpush3.msra.mxu0 %v4101_v33 }
 0x7c4   :  { %2951 = vmatprep.subr.mxu0 %v3191_v2 }
 0x7c5   :  { %2952 = vmatpush3.msra.mxu0 %v4108_v34 }
 0x7c6   :  { %2953 = vmatprep.subr.mxu0 %v3191_v2 }
 0x7c7   :  { %2954 = vmatpush3.msra.mxu0 %v4115_v35 }
 0x7c8   :  { %2955 = vmatprep.subr.mxu0 %v3191_v2 }
 0x7c9   :  { %2956 = vmatpush3.msra.mxu0 %v4122_v37 }
 0x7ca   :  { %2957 = vmatprep.subr.mxu0 %v3191_v2 }
 0x7cb   :  { %2958 = vmatpush3.msra.mxu0 %v4129_v47 }
 0x7cc   :  { %2959 = vmatprep.subr.mxu0 %v3191_v2 }
 0x7cd   :  { %2960 = vmatpush3.msra.mxu0 %v4136_v48 }
 0x7ce   :  { %2961 = vmatprep.subr.mxu0 %v3191_v2 }
 0x7cf   :  { %2962 = vmatpush3.msra.mxu0 %v4143_v49 }
 0x7d0   :  { %3001 = vmatprep.subr.mxu0 %v3191_v2 }
 0x7fc   :  { %v1280_v38 = vpop.f32.mrf.mxu0 }
 0x7fd   :  { %v1281_v39 = vadd.f32 %v3709_v51, %v1280_v38  ;;  %v4316_v51 = vld [vmem:[%s4537_s6 + $0x38] sm:$0xff] }
 0x7fe   :  { %v2841_v40 = vpop.f32.mrf.mxu0 }
 0x7ff   :  { %2037 = vst [vmem:[%s4540_s8 + $0x20] sm:$0xff] %v1281_v39 }
 0x821   :  { %v1542_v10 = vpop.permute.xlu0 %1541 }
 0x822   :  { %v1544_v12 = vsel %vm107_vm2, %v2045_v9, %v1542_v10 }
 0x823   :  { %2964 = vmatmul.mubr.f32.vlgmr.msra.gmra.mxu0 %v1544_v12 }
 0x824   :  { %3002 = vmatpush3.msra.mxu0 %v4316_v51  ;;  %3017 = vmatprep.mubr.msk.f32.mxu0 %vm3192_vm0, %v3191_v2 }
 0x825   :  { %3003 = vmatprep.subr.mxu0 %v3191_v2 }
 0x826   :  { %3004 = vmatpush3.msra.mxu0 %v4325_v14 }
 0x827   :  { %3005 = vmatprep.subr.mxu0 %v3191_v2 }
 0x828   :  { %3006 = vmatpush3.msra.mxu0 %v4332_v16 }
 0x829   :  { %3007 = vmatprep.subr.mxu0 %v3191_v2 }
 0x82a   :  { %3008 = vmatpush3.msra.mxu0 %v4339_v18 }
 0x82b   :  { %3009 = vmatprep.subr.mxu0 %v3191_v2 }
 0x82c   :  { %3010 = vmatpush3.msra.mxu0 %v4346_v21 }
 0x82d   :  { %3011 = vmatprep.subr.mxu0 %v3191_v2 }
 0x82e   :  { %3012 = vmatpush3.msra.mxu0 %v4353_v3 }
 0x82f   :  { %3013 = vmatprep.subr.mxu0 %v3191_v2 }
 0x830   :  { %3014 = vmatpush3.msra.mxu0 %v4360_v4 }
 0x831   :  { %3015 = vmatprep.subr.mxu0 %v3191_v2 }
 0x832   :  { %3016 = vmatpush3.msra.mxu0 %v4367_v52 }
 0x833   :  { %3055 = vmatprep.subr.mxu0 %v3191_v2 }
 0x870   :  { %v1446_v53 = vpop.f32.mrf.mxu0 }
 0x871   :  { %v1447_v55 = vadd.f32 %v4374_v54, %v1446_v53 }
 0x872   :  { %v2911_v56 = vpop.f32.mrf.mxu0 }
 0x873   :  { %3137 = vtanh.f32 %v1447_v55 }
 0x880   :  { %v3138_v15 = vpop.eup %3137 }
 0x881   :  { %1616 = vrot.lane.b32.xlu1 %v3138_v15, %s3193_s13  ;;  %2929 = vmatmul.mubr.msk.f32.vlgmr.msra.gmra.mxu1 %vm107_vm2, %v3138_v15 }
 0x882   :  { %2967 = vmatpush3.msra.mxu1 %v3961_v26  ;;  %2998 = vmatprep.mubr.msk.f32.mxu1 %vm3192_vm0, %v3191_v2 }
 0x883   :  { %2968 = vmatprep.subr.mxu1 %v3191_v2 }
 0x884   :  { %2969 = vmatpush3.msra.mxu1 %v3970_v27 }
 0x885   :  { %1774 = vperm.xlu1 %3114, %v2049_v19   ;;  %2970 = vmatprep.subr.mxu1 %v3191_v2 }
 0x886   :  { %2971 = vmatpush3.msra.mxu1 %v3977_v50 }
 0x887   :  { %2972 = vmatprep.subr.mxu1 %v3191_v2 }
 0x888   :  { %2973 = vmatpush3.msra.mxu1 %v3984_v60 }
 0x889   :  { %2974 = vmatprep.subr.mxu1 %v3191_v2 }
 0x88a   :  { %2975 = vmatpush3.msra.mxu1 %v3991_v61 }
 0x88b   :  { %2976 = vmatprep.subr.mxu1 %v3191_v2 }
 0x88c   :  { %2977 = vmatpush3.msra.mxu1 %v3998_v62 }
 0x88d   :  { %2978 = vmatprep.subr.mxu1 %v3191_v2 }
 0x88e   :  { %2979 = vmatpush3.msra.mxu1 %v4005_v63 }
 0x88f   :  { %2980 = vmatprep.subr.mxu1 %v3191_v2 }
 0x890   :  { %2981 = vmatpush3.msra.mxu1 %v4199_v57 }
 0x891   :  { %2982 = vmatprep.subr.mxu1 %v3191_v2 }
 0x892   :  { %2983 = vmatpush3.msra.mxu1 %v4206_v58 }
 0x893   :  { %2984 = vmatprep.subr.mxu1 %v3191_v2 }
 0x894   :  { %2985 = vmatpush3.msra.mxu1 %v4213_v59 }
 0x895   :  { %2986 = vmatprep.subr.mxu1 %v3191_v2 }
 0x896   :  { %2987 = vmatpush3.msra.mxu1 %v4220_v5 }
 0x897   :  { %2988 = vmatprep.subr.mxu1 %v3191_v2 }
 0x898   :  { %2989 = vmatpush3.msra.mxu1 %v4227_v6 }
 0x899   :  { %2990 = vmatprep.subr.mxu1 %v3191_v2 }
 0x89a   :  { %2991 = vmatpush3.msra.mxu1 %v4234_v7 }
 0x89b   :  { %2992 = vmatprep.subr.mxu1 %v3191_v2 }
 0x89c   :  { %2993 = vmatpush3.msra.mxu1 %v4241_v8 }
 0x89d   :  { %2994 = vmatprep.subr.mxu1 %v3191_v2 }
 0x89e   :  { %2995 = vmatpush3.msra.mxu1 %v4248_v11 }
 0x89f   :  { %2996 = vmatprep.subr.mxu1 %v3191_v2 }
 0x8a0   :  { %2997 = vmatpush3.msra.mxu1 %v4255_v13 }
 0x8a1   :  { %3020 = vmatprep.subr.mxu1 %v3191_v2 }
 0x8e3   :  { %v1611_v22 = vpop.f32.mrf.mxu0 }
 0x8e4   :  { %v1612_v23 = vadd.f32 %v4262_v17, %v1611_v22 }
 0x8e5   :  { %v2965_v24 = vpop.f32.mrf.mxu0 }
 0x8e6   :  { %3139 = vtanh.f32 %v1612_v23 }
 0x8f3   :  { %v3140_v25 = vpop.eup %3139  ;;  %v1617_v36 = vpop.permute.xlu1 %1616 }
 0x8f4   :  { %v1619_v38 = vsel %vm107_vm2, %v3140_v25, %v1617_v36  ;;  %1781 = vrot.lane.b32.xlu0 %v3140_v25, %s3193_s13 }
 0x8f5   :  { %2999 = vmatmul.mubr.f32.vlgmr.msra.gmra.mxu1 %v1619_v38 }
 0x8f6   :  { %3021 = vmatpush3.msra.mxu1 %v4036_v44  ;;  %3052 = vmatprep.mubr.msk.f32.mxu1 %vm3192_vm0, %v3191_v2 }
 0x8f7   :  { %3022 = vmatprep.subr.mxu1 %v3191_v2 }
 0x8f8   :  { %3023 = vmatpush3.msra.mxu1 %v4045_v45  ;;  %v4456_v45 = vld [vmem:[%s4539_s7] ss:$0 sm:$0xff] }
 0x8f9   :  { %3024 = vmatprep.subr.mxu1 %v3191_v2 }
 0x8fa   :  { %3025 = vmatpush3.msra.mxu1 %v4052_v46 }
 0x8fb   :  { %3026 = vmatprep.subr.mxu1 %v3191_v2 }
 0x8fc   :  { %3027 = vmatpush3.msra.mxu1 %v4059_v0 }
 0x8fd   :  { %3028 = vmatprep.subr.mxu1 %v3191_v2 }
 0x8fe   :  { %3029 = vmatpush3.msra.mxu1 %v4066_v1 }
 0x8ff   :  { %3030 = vmatprep.subr.mxu1 %v3191_v2 }
 0x900   :  { %3031 = vmatpush3.msra.mxu1 %v4073_v20  ;;  %v1775_v1 = vpop.permute.xlu1 %1774  ;;  %v1772_v20 = vpop.permute.xlu0 %1771 }
 0x901   :  { %3032 = vmatprep.subr.mxu1 %v3191_v2 }
 0x902   :  { %3033 = vmatpush3.msra.mxu1 %v4080_v28  ;;  %v1776_v28 = vsel %vm92_vm1, %v1772_v20, %v1775_v1 }
 0x903   :  { %3034 = vmatprep.subr.mxu1 %v3191_v2  ;;  %vm1777_vm10 = vcmp.eq.s32.totalorder %v1776_v28, %v3422_v32 }
 0x904   :  { %3035 = vmatpush3.msra.mxu1 %v4087_v30  ;;  %v2050_v30 = vsel %vm1777_vm10, 1.0, %v3191_v2 }
 0x905   :  { %3036 = vmatprep.subr.mxu1 %v3191_v2 }
 0x906   :  { %3037 = vmatpush3.msra.mxu1 %v4094_v31 }
 0x907   :  { %3038 = vmatprep.subr.mxu1 %v3191_v2 }
 0x908   :  { %3039 = vmatpush3.msra.mxu1 %v4101_v33 }
 0x909   :  { %3040 = vmatprep.subr.mxu1 %v3191_v2 }
 0x90a   :  { %3041 = vmatpush3.msra.mxu1 %v4108_v34 }
 0x90b   :  { %3042 = vmatprep.subr.mxu1 %v3191_v2 }
 0x90c   :  { %3043 = vmatpush3.msra.mxu1 %v4115_v35 }
 0x90d   :  { %3044 = vmatprep.subr.mxu1 %v3191_v2 }
 0x90e   :  { %3045 = vmatpush3.msra.mxu1 %v4122_v37 }
 0x90f   :  { %3046 = vmatprep.subr.mxu1 %v3191_v2 }
 0x910   :  { %3047 = vmatpush3.msra.mxu1 %v4129_v47 }
 0x911   :  { %3048 = vmatprep.subr.mxu1 %v3191_v2 }
 0x912   :  { %3049 = vmatpush3.msra.mxu1 %v4136_v48 }
 0x913   :  { %3050 = vmatprep.subr.mxu1 %v3191_v2 }
 0x914   :  { %3051 = vmatpush3.msra.mxu1 %v4143_v49 }
 0x915   :  { %3090 = vmatprep.subr.mxu1 %v3191_v2 }
 0x941   :  { %v1520_v44 = vpop.f32.mrf.mxu1 }
 0x942   :  { %v1521_v46 = vadd.f32 %v4456_v45, %v1520_v44 }
 0x943   :  { %v2930_v0 = vpop.f32.mrf.mxu1 }
 0x944   :  { %2042 = vst [vmem:[%s4540_s8 + $0x28] sm:$0xff] %v1521_v46 }
 0x966   :  { %v1782_v31 = vpop.permute.xlu0 %1781 }
 0x967   :  { %v1784_v33 = vsel %vm107_vm2, %v2050_v30, %v1782_v31 }
 0x968   :  { %3053 = vmatmul.mubr.f32.vlgmr.msra.gmra.mxu1 %v1784_v33 }
 0x969   :  { %3091 = vmatpush3.msra.mxu1 %v4316_v51  ;;  %3106 = vmatprep.mubr.msk.f32.mxu1 %vm3192_vm0, %v3191_v2 }
 0x96a   :  { %3092 = vmatprep.subr.mxu1 %v3191_v2 }
 0x96b   :  { %3093 = vmatpush3.msra.mxu1 %v4325_v14 }
 0x96c   :  { %3094 = vmatprep.subr.mxu1 %v3191_v2 }
 0x96d   :  { %3095 = vmatpush3.msra.mxu1 %v4332_v16 }
 0x96e   :  { %3096 = vmatprep.subr.mxu1 %v3191_v2 }
 0x96f   :  { %3097 = vmatpush3.msra.mxu1 %v4339_v18 }
 0x970   :  { %3098 = vmatprep.subr.mxu1 %v3191_v2 }
 0x971   :  { %3099 = vmatpush3.msra.mxu1 %v4346_v21 }
 0x972   :  { %3100 = vmatprep.subr.mxu1 %v3191_v2 }
 0x973   :  { %3101 = vmatpush3.msra.mxu1 %v4353_v3 }
 0x974   :  { %3102 = vmatprep.subr.mxu1 %v3191_v2 }
 0x975   :  { %3103 = vmatpush3.msra.mxu1 %v4360_v4 }
 0x976   :  { %3104 = vmatprep.subr.mxu1 %v3191_v2 }
 0x977   :  { %3105 = vmatpush3.msra.mxu1 %v4367_v52 }
 0x9b5   :  { %v1686_v29 = vpop.f32.mrf.mxu1 }
 0x9b6   :  { %v1687_v32 = vadd.f32 %v4374_v54, %v1686_v29 }
 0x9b7   :  { %v3000_v34 = vpop.f32.mrf.mxu1 }
 0x9b8   :  { %3141 = vtanh.f32 %v1687_v32 }
 0x9c5   :  { %v3142_v35 = vpop.eup %3141 }
 0x9c6   :  { %1856 = vrot.lane.b32.xlu1 %v3142_v35, %s3193_s13  ;;  %3018 = vmatmul.mubr.msk.f32.vlgmr.msra.gmra.mxu0 %vm107_vm2, %v3142_v35 }
 0x9c7   :  { %3056 = vmatpush3.msra.mxu0 %v3961_v26  ;;  %3087 = vmatprep.mubr.msk.f32.mxu0 %vm3192_vm0, %v3191_v2 }
 0x9c8   :  { %3057 = vmatprep.subr.mxu0 %v3191_v2 }
 0x9c9   :  { %3058 = vmatpush3.msra.mxu0 %v3970_v27 }
 0x9ca   :  { %3059 = vmatprep.subr.mxu0 %v3191_v2 }
 0x9cb   :  { %3060 = vmatpush3.msra.mxu0 %v3977_v50 }
 0x9cc   :  { %3061 = vmatprep.subr.mxu0 %v3191_v2 }
 0x9cd   :  { %3062 = vmatpush3.msra.mxu0 %v3984_v60 }
 0x9ce   :  { %3063 = vmatprep.subr.mxu0 %v3191_v2 }
 0x9cf   :  { %3064 = vmatpush3.msra.mxu0 %v3991_v61 }
 0x9d0   :  { %3065 = vmatprep.subr.mxu0 %v3191_v2 }
 0x9d1   :  { %3066 = vmatpush3.msra.mxu0 %v3998_v62 }
 0x9d2   :  { %3067 = vmatprep.subr.mxu0 %v3191_v2 }
 0x9d3   :  { %3068 = vmatpush3.msra.mxu0 %v4005_v63 }
 0x9d4   :  { %3069 = vmatprep.subr.mxu0 %v3191_v2 }
 0x9d5   :  { %3070 = vmatpush3.msra.mxu0 %v4199_v57 }
 0x9d6   :  { %3071 = vmatprep.subr.mxu0 %v3191_v2 }
 0x9d7   :  { %3072 = vmatpush3.msra.mxu0 %v4206_v58 }
 0x9d8   :  { %3073 = vmatprep.subr.mxu0 %v3191_v2 }
 0x9d9   :  { %3074 = vmatpush3.msra.mxu0 %v4213_v59 }
 0x9da   :  { %3075 = vmatprep.subr.mxu0 %v3191_v2 }
 0x9db   :  { %3076 = vmatpush3.msra.mxu0 %v4220_v5 }
 0x9dc   :  { %3077 = vmatprep.subr.mxu0 %v3191_v2 }
 0x9dd   :  { %3078 = vmatpush3.msra.mxu0 %v4227_v6 }
 0x9de   :  { %3079 = vmatprep.subr.mxu0 %v3191_v2 }
 0x9df   :  { %3080 = vmatpush3.msra.mxu0 %v4234_v7 }
 0x9e0   :  { %3081 = vmatprep.subr.mxu0 %v3191_v2 }
 0x9e1   :  { %3082 = vmatpush3.msra.mxu0 %v4241_v8 }
 0x9e2   :  { %3083 = vmatprep.subr.mxu0 %v3191_v2 }
 0x9e3   :  { %3084 = vmatpush3.msra.mxu0 %v4248_v11 }
 0x9e4   :  { %3085 = vmatprep.subr.mxu0 %v3191_v2 }
 0x9e5   :  { %3086 = vmatpush3.msra.mxu0 %v4255_v13 }
 0xa28   :  { %v1851_v26 = vpop.f32.mrf.mxu1 }
 0xa29   :  { %v1852_v27 = vadd.f32 %v4262_v17, %v1851_v26 }
 0xa2a   :  { %v3054_v50 = vpop.f32.mrf.mxu1 }
 0xa2b   :  { %3143 = vtanh.f32 %v1852_v27 }
 0xa38   :  { %v3144_v60 = vpop.eup %3143  ;;  %v1857_v61 = vpop.permute.xlu1 %1856 }
 0xa39   :  { %v1859_v62 = vsel %vm107_vm2, %v3144_v60, %v1857_v61 }
 0xa3a   :  { %3088 = vmatmul.mubr.f32.vlgmr.msra.gmra.mxu0 %v1859_v62 }
 0xa86   :  { %v1760_v63 = vpop.f32.mrf.mxu0 }
 0xa87   :  { %v1761_v37 = vadd.f32 %v4456_v45, %v1760_v63 }
 0xa88   :  { %v3019_v47 = vpop.f32.mrf.mxu0 }
 0xa89   :  { %2047 = vst [vmem:[%s4540_s8 + $0x30] sm:$0xff] %v1761_v37 }
 0xafa   :  { %v1926_v2 = vpop.f32.mrf.mxu0 }
 0xafb   :  { %v1927_v48 = vadd.f32 %v4374_v54, %v1926_v2 }
 0xafc   :  { %v3089_v49 = vpop.f32.mrf.mxu0 }
 0xafd   :  { %3145 = vtanh.f32 %v1927_v48 }
 0xb0a   :  { %v3146_v57 = vpop.eup %3145 }
 0xb0b   :  { %3107 = vmatmul.mubr.msk.f32.vlgmr.msra.gmra.mxu1 %vm107_vm2, %v3146_v57 }
 0xbcb   :  { %v2000_v58 = vpop.f32.mrf.mxu1 }
 0xbcc   :  { %v2001_v59 = vadd.f32 %v4456_v45, %v2000_v58 }
 0xbcd   :  { %v3108_v5 = vpop.f32.mrf.mxu1 }
 0xbce   :  { %2052 = vst [vmem:[%s4540_s8 + $0x38] sm:$0xff] %v2001_v59 }

</bundles_post_ra>
